<compile_context>
chip_gen: v7x
topology: tpu7x:2x2x1
jax: 0.10.0
libtpu: 0.0.40
codegen_flags: <defaults>
</compile_context>

<pallas_src>
import numpy as np
import jax
import jax.numpy as jnp
from jax.experimental import pallas as pl
from jax.experimental.pallas import tpu as pltpu

# ---- MelSpectrogramConfig (standard values used with this module) -----------------
SR = 22050
WIN_LENGTH = 1024
HOP_LENGTH = 256
N_FFT = 1024
F_MIN = 0.0
F_MAX = 8000.0
N_MELS = 80
POWER = 1.0                     # magnitude spectrogram
N_FREQS = N_FFT // 2 + 1        # 513

N_MELS_PAD = 128                # lane-dense output width (sliced back to 80 in the wrapper)
TM_MAX = 512                    # max frame rows per grid step
NC = N_FFT // HOP_LENGTH        # 4 hop-chunks per frame
assert N_FFT % HOP_LENGTH == 0


def _round_up(x: int, m: int) -> int:
    return ((x + m - 1) // m) * m


def _cdiv(a: int, b: int) -> int:
    return -(-a // b)


# ---- librosa.filters.mel re-implementation (Slaney scale + slaney norm) ------------
def _hz_to_mel(f):
    f = np.asarray(f, dtype=np.float64)
    f_sp = 200.0 / 3
    mels = f / f_sp
    min_log_hz = 1000.0
    min_log_mel = min_log_hz / f_sp
    logstep = np.log(6.4) / 27.0
    return np.where(f >= min_log_hz,
                    min_log_mel + np.log(np.maximum(f, 1e-10) / min_log_hz) / logstep,
                    mels)


def _mel_to_hz(m):
    m = np.asarray(m, dtype=np.float64)
    f_sp = 200.0 / 3
    freqs = f_sp * m
    min_log_hz = 1000.0
    min_log_mel = min_log_hz / f_sp
    logstep = np.log(6.4) / 27.0
    return np.where(m >= min_log_mel,
                    min_log_hz * np.exp(logstep * (m - min_log_mel)),
                    freqs)


def librosa_mel_basis(sr, n_fft, n_mels, fmin, fmax):
    n_freqs = n_fft // 2 + 1
    fftfreqs = np.linspace(0.0, sr / 2.0, n_freqs)
    mel_pts = np.linspace(_hz_to_mel(fmin), _hz_to_mel(fmax), n_mels + 2)
    mel_f = _mel_to_hz(mel_pts)
    fdiff = np.diff(mel_f)
    ramps = mel_f[:, None] - fftfreqs[None, :]

    weights = np.zeros((n_mels, n_freqs), dtype=np.float64)
    for i in range(n_mels):
        lower = -ramps[i] / fdiff[i]
        upper = ramps[i + 2] / fdiff[i + 1]
        weights[i] = np.maximum(0.0, np.minimum(lower, upper))

    # slaney normalization
    enorm = 2.0 / (mel_f[2:n_mels + 2] - mel_f[:n_mels])
    weights *= enorm[:, None]
    return weights              # (n_mels, n_freqs) float64


def make_bases():
    """Fused windowed real-DFT basis (cos|sin), hop-chunked and truncated to the mel support
    (bf16), plus the lane-padded mel filterbank (bf16). Deterministic, no checkpoint."""
    mel_w = librosa_mel_basis(SR, N_FFT, N_MELS, F_MIN, F_MAX)      # (n_mels, n_freqs)

    # Frequency bins above the mel support contribute nothing -> truncate (derived from the
    # actual filterbank support), rounded up to a multiple of 128 lanes (384 for this config).
    nz = np.nonzero(mel_w.sum(axis=0) > 0)[0]
    n_keep = int(nz[-1]) + 1 if nz.size else N_FREQS
    nk = _round_up(n_keep, 128)

    n = np.arange(N_FFT, dtype=np.float64)
    window = 0.5 - 0.5 * np.cos(2.0 * np.pi * n / N_FFT)            # periodic Hann
    k = np.arange(min(nk, N_FREQS), dtype=np.float64)
    ang = 2.0 * np.pi * np.outer(n, k) / N_FFT
    cos_b = window[:, None] * np.cos(ang)                           # (n_fft, <=nk)
    sin_b = -window[:, None] * np.sin(ang)
    if nk > N_FREQS:                                                # pad to lane multiple
        padc = nk - N_FREQS
        cos_b = np.pad(cos_b, ((0, 0), (0, padc)))
        sin_b = np.pad(sin_b, ((0, 0), (0, padc)))
    basis = np.concatenate([cos_b, sin_b], axis=1)                  # (n_fft, 2*nk)
    basis = basis.reshape(NC, HOP_LENGTH, 2 * nk)                   # hop-chunked for the kernel

    mel_t = mel_w.T[:min(nk, N_FREQS)]                              # (<=nk, n_mels)
    if nk > N_FREQS:
        mel_t = np.pad(mel_t, ((0, nk - N_FREQS), (0, 0)))
    mel_t = np.pad(mel_t, ((0, 0), (0, N_MELS_PAD - N_MELS)))       # (nk, 128)

    # bf16 storage: halves basis VMEM + feeds the MXU at native bf16 rate (f32 accumulate).
    return jnp.asarray(basis, dtype=jnp.bfloat16), jnp.asarray(mel_t, dtype=jnp.bfloat16)


# ---- Pallas kernel ------------------------------------------------------------------
def mel_kernel(w_ref, basis_ref, melfb_ref, out_ref):
    # w_ref:     (1, TM+8, HOP)     f32  hop-chunked audio window for this tile
    # basis_ref: (NC, HOP, 2*NK)    bf16 fused windowed cos|sin DFT basis, hop-chunked
    # melfb_ref: (NK, N_MELS_PAD)   bf16 mel filterbank (lane-padded)
    # out_ref:   (1, TM, N_MELS_PAD) f32 log-mel output tile
    tm = out_ref.shape[1]
    nc = basis_ref.shape[0]
    nk = melfb_ref.shape[0]

    # Frame m == concat of hop-chunks m..m+NC-1, so STFT = sum_c shifted_window_c @ basis_c.
    # Static unroll over the NC = n_fft/hop shifts; bf16 operands, f32 accumulation.
    acc = jnp.dot(w_ref[0, pl.ds(0, tm), :].astype(jnp.bfloat16), basis_ref[0],
                  preferred_element_type=jnp.float32)               # (TM, 2*NK)
    for c in range(1, nc):
        lhs = w_ref[0, pl.ds(c, tm), :].astype(jnp.bfloat16)
        acc = acc + jnp.dot(lhs, basis_ref[c], preferred_element_type=jnp.float32)

    re = acc[:, :nk]                                                # lane-aligned static slices
    im = acc[:, nk:]
    mag = jnp.sqrt(re * re + im * im)                               # power == 1.0 -> |STFT|
    mel = jnp.dot(mag.astype(jnp.bfloat16), melfb_ref[...],
                  preferred_element_type=jnp.float32)               # (TM, 128) lane-dense
    out_ref[0] = jnp.log(jnp.maximum(mel, 1e-5))                    # clamp(min=1e-5).log()


@jax.jit
def audio_to_mel(audio: jnp.ndarray) -> jnp.ndarray:
    """audio: [B, T] float32 -> mel: [B, n_mels, T'] float32 (T' = 1 + T // hop)."""
    B, T = audio.shape
    pad = N_FFT // 2
    # torchaudio Spectrogram: center=True, pad_mode='reflect' (requires T >= n_fft//2 + 1).
    padded = jnp.pad(audio.astype(jnp.float32), ((0, 0), (pad, pad)), mode="reflect")
    n_frames = 1 + T // HOP_LENGTH

    # Adaptive tile height: big tiles for long audio (fewer grid steps), shrunk for short
    # clips so the grid still has >= 2 steps (keeps both v7x TensorCores busy when B >= 2).
    tm = min(TM_MAX, _round_up(max(n_frames, 8), 8))
    n_tiles = _cdiv(n_frames, tm)
    if B * n_tiles < 2 and n_frames > 8:
        tm = _round_up(_cdiv(n_frames, 2), 8)
        n_tiles = _cdiv(n_frames, tm)
    tm_w = tm + 8                                                   # tm + (NC-1) rows, 8-aligned

    # Hop-chunk the padded audio and build one (tm_w, HOP) window per tile — ~1x audio with
    # ~3% overlap, instead of the old 4x-audio frames gather.  Frames never straddle batch
    # items; rows past n_frames read zero chunks and are sliced off below.
    n_chunks = n_tiles * tm + 8
    total_len = n_chunks * HOP_LENGTH
    padded = jnp.pad(padded, ((0, 0), (0, total_len - padded.shape[1])))
    chunks = padded.reshape(B, n_chunks, HOP_LENGTH)
    win_rows = jnp.arange(n_tiles)[:, None] * tm + jnp.arange(tm_w)[None, :]
    windows = chunks[:, win_rows, :].reshape(B * n_tiles, tm_w, HOP_LENGTH)
    # TODO(synk): the residual ~1x window restructure above could also be removed with a
    # manual make_async_copy of overlapping (tm_w, HOP) windows from an pl.ANY-space input.

    basis, melfb = make_bases()                                     # bf16 constants
    nk2 = basis.shape[2]
    nk = melfb.shape[0]

    m_total = B * n_tiles * tm
    cost = pl.CostEstimate(
        flops=2 * m_total * (N_FFT * nk2 + nk * N_MELS_PAD),
        transcendentals=m_total * (nk + N_MELS_PAD),                # sqrt + log
        bytes_accessed=int(windows.size) * 4 + int(basis.size) * 2
                       + int(melfb.size) * 2 + m_total * N_MELS_PAD * 4,
    )

    out = pl.pallas_call(
        mel_kernel,
        out_shape=jax.ShapeDtypeStruct((B * n_tiles, tm, N_MELS_PAD), jnp.float32),
        grid_spec=pltpu.PrefetchScalarGridSpec(
            num_scalar_prefetch=0,
            grid=(B * n_tiles,),
            in_specs=[
                pl.BlockSpec((1, tm_w, HOP_LENGTH), lambda i: (i, 0, 0)),
                # Constant operands: single-buffered to save VMEM (index_map is constant).
                pl.BlockSpec((NC, HOP_LENGTH, nk2), lambda i: (0, 0, 0),
                             pipeline_mode=pl.Buffered(1)),
                pl.BlockSpec((nk, N_MELS_PAD), lambda i: (0, 0),
                             pipeline_mode=pl.Buffered(1)),
            ],
            out_specs=pl.BlockSpec((1, tm, N_MELS_PAD), lambda i: (i, 0, 0)),
        ),
        compiler_params=pltpu.CompilerParams(
            dimension_semantics=("parallel",),
            vmem_limit_bytes=40 * 1024 * 1024,
        ),
        cost_estimate=cost,
    )(windows, basis, melfb)

    # Drop row/lane padding, restore [B, n_mels, T'] (PyTorch layout).
    out = out.reshape(B, n_tiles * tm, N_MELS_PAD)[:, :n_frames, :N_MELS]
    return jnp.transpose(out, (0, 2, 1))


if __name__ == "__main__":
    key = jax.random.PRNGKey(0)
    B, T = 2, 2048                       # small audio; T' = 1 + 2048 // 256 = 9 frames
    audio = jax.random.normal(key, (B, T), dtype=jnp.float32)

    mel = audio_to_mel(audio)
    jax.block_until_ready(mel)

    assert mel.shape == (B, N_MELS, 1 + T // HOP_LENGTH), mel.shape
    assert mel.dtype == jnp.float32
    assert bool(jnp.all(jnp.isfinite(mel)))
    print("KERNEL_OK")
</pallas_src>

<mosaic_0001>
module attributes {stable_mosaic.version = 11 : i64} {
  func.func @mel_kernel(%arg0: i32, %arg1: memref<1x24x256xf32, #tpu.memory_space<vmem>>, %arg2: memref<4x256x768xbf16, #tpu.memory_space<vmem>>, %arg3: memref<384x128xbf16, #tpu.memory_space<vmem>>, %arg4: memref<1x16x128xf32, #tpu.memory_space<vmem>>) attributes {dimension_semantics = [#tpu.dimension_semantics<parallel>], iteration_bounds = array<i64: 2>, scalar_prefetch = 0 : i64, scratch_operands = 0 : i64, tpu.core_type = #tpu.core_type<tc>, window_params = [{transform_indices = @transform_0, window_bounds = array<i64: 1, 24, 256>}, {pipeline_mode = #tpu.pipeline_mode<synchronous>, transform_indices = @transform_1, window_bounds = array<i64: 4, 256, 768>}, {pipeline_mode = #tpu.pipeline_mode<synchronous>, transform_indices = @transform_2, window_bounds = array<i64: 384, 128>}, {transform_indices = @transform_3, window_bounds = array<i64: 1, 16, 128>}]} {
    %c0 = arith.constant 0 : index
    %c0_0 = arith.constant 0 : index
    %c0_1 = arith.constant 0 : index
    %0 = vector.load %arg1[%c0, %c0_0, %c0_1] : memref<1x24x256xf32, #tpu.memory_space<vmem>>, vector<1x16x256xf32>
    %1 = vector.shape_cast %0 : vector<1x16x256xf32> to vector<16x256xf32>
    %2 = arith.truncf %1 : vector<16x256xf32> to vector<16x256xbf16>
    %c0_2 = arith.constant 0 : index
    %c0_3 = arith.constant 0 : index
    %c0_4 = arith.constant 0 : index
    %3 = vector.load %arg2[%c0_2, %c0_3, %c0_4] : memref<4x256x768xbf16, #tpu.memory_space<vmem>>, vector<1x256x768xbf16>
    %4 = vector.shape_cast %3 : vector<1x256x768xbf16> to vector<256x768xbf16>
    %cst = arith.constant dense<0.000000e+00> : vector<16x768xf32>
    %5 = tpu.matmul %2, %4, %cst {dimension_numbers = #tpu.dot_dimension_numbers<[1], [0], [0], [1], [0, 0, 1, 1], [], []>} : vector<16x256xbf16>, vector<256x768xbf16>, vector<16x768xf32> -> vector<16x768xf32>
    %c0_5 = arith.constant 0 : index
    %c1 = arith.constant 1 : index
    %c0_6 = arith.constant 0 : index
    %6 = vector.load %arg1[%c0_5, %c1, %c0_6] : memref<1x24x256xf32, #tpu.memory_space<vmem>>, vector<1x16x256xf32>
    %7 = vector.shape_cast %6 : vector<1x16x256xf32> to vector<16x256xf32>
    %8 = arith.truncf %7 : vector<16x256xf32> to vector<16x256xbf16>
    %c1_7 = arith.constant 1 : index
    %c0_8 = arith.constant 0 : index
    %c0_9 = arith.constant 0 : index
    %9 = vector.load %arg2[%c1_7, %c0_8, %c0_9] : memref<4x256x768xbf16, #tpu.memory_space<vmem>>, vector<1x256x768xbf16>
    %10 = vector.shape_cast %9 : vector<1x256x768xbf16> to vector<256x768xbf16>
    %cst_10 = arith.constant dense<0.000000e+00> : vector<16x768xf32>
    %11 = tpu.matmul %8, %10, %cst_10 {dimension_numbers = #tpu.dot_dimension_numbers<[1], [0], [0], [1], [0, 0, 1, 1], [], []>} : vector<16x256xbf16>, vector<256x768xbf16>, vector<16x768xf32> -> vector<16x768xf32>
    %12 = arith.addf %5, %11 : vector<16x768xf32>
    %c0_11 = arith.constant 0 : index
    %c2 = arith.constant 2 : index
    %c0_12 = arith.constant 0 : index
    %13 = vector.load %arg1[%c0_11, %c2, %c0_12] : memref<1x24x256xf32, #tpu.memory_space<vmem>>, vector<1x16x256xf32>
    %14 = vector.shape_cast %13 : vector<1x16x256xf32> to vector<16x256xf32>
    %15 = arith.truncf %14 : vector<16x256xf32> to vector<16x256xbf16>
    %c2_13 = arith.constant 2 : index
    %c0_14 = arith.constant 0 : index
    %c0_15 = arith.constant 0 : index
    %16 = vector.load %arg2[%c2_13, %c0_14, %c0_15] : memref<4x256x768xbf16, #tpu.memory_space<vmem>>, vector<1x256x768xbf16>
    %17 = vector.shape_cast %16 : vector<1x256x768xbf16> to vector<256x768xbf16>
    %cst_16 = arith.constant dense<0.000000e+00> : vector<16x768xf32>
    %18 = tpu.matmul %15, %17, %cst_16 {dimension_numbers = #tpu.dot_dimension_numbers<[1], [0], [0], [1], [0, 0, 1, 1], [], []>} : vector<16x256xbf16>, vector<256x768xbf16>, vector<16x768xf32> -> vector<16x768xf32>
    %19 = arith.addf %12, %18 : vector<16x768xf32>
    %c0_17 = arith.constant 0 : index
    %c3 = arith.constant 3 : index
    %c0_18 = arith.constant 0 : index
    %20 = vector.load %arg1[%c0_17, %c3, %c0_18] : memref<1x24x256xf32, #tpu.memory_space<vmem>>, vector<1x16x256xf32>
    %21 = vector.shape_cast %20 : vector<1x16x256xf32> to vector<16x256xf32>
    %22 = arith.truncf %21 : vector<16x256xf32> to vector<16x256xbf16>
    %c3_19 = arith.constant 3 : index
    %c0_20 = arith.constant 0 : index
    %c0_21 = arith.constant 0 : index
    %23 = vector.load %arg2[%c3_19, %c0_20, %c0_21] : memref<4x256x768xbf16, #tpu.memory_space<vmem>>, vector<1x256x768xbf16>
    %24 = vector.shape_cast %23 : vector<1x256x768xbf16> to vector<256x768xbf16>
    %cst_22 = arith.constant dense<0.000000e+00> : vector<16x768xf32>
    %25 = tpu.matmul %22, %24, %cst_22 {dimension_numbers = #tpu.dot_dimension_numbers<[1], [0], [0], [1], [0, 0, 1, 1], [], []>} : vector<16x256xbf16>, vector<256x768xbf16>, vector<16x768xf32> -> vector<16x768xf32>
    %26 = arith.addf %19, %25 : vector<16x768xf32>
    %27 = vector.extract_strided_slice %26 {offsets = [0, 0], sizes = [16, 384], strides = [1, 1]} : vector<16x768xf32> to vector<16x384xf32>
    %28 = vector.extract_strided_slice %26 {offsets = [0, 384], sizes = [16, 384], strides = [1, 1]} : vector<16x768xf32> to vector<16x384xf32>
    %29 = arith.mulf %27, %27 : vector<16x384xf32>
    %30 = arith.mulf %28, %28 : vector<16x384xf32>
    %31 = arith.addf %29, %30 : vector<16x384xf32>
    %32 = math.sqrt %31 : vector<16x384xf32>
    %33 = arith.truncf %32 : vector<16x384xf32> to vector<16x384xbf16>
    %c0_23 = arith.constant 0 : index
    %c0_24 = arith.constant 0 : index
    %34 = vector.load %arg3[%c0_23, %c0_24] : memref<384x128xbf16, #tpu.memory_space<vmem>>, vector<384x128xbf16>
    %cst_25 = arith.constant dense<0.000000e+00> : vector<16x128xf32>
    %35 = tpu.matmul %33, %34, %cst_25 {dimension_numbers = #tpu.dot_dimension_numbers<[1], [0], [0], [1], [0, 0, 1, 1], [], []>} : vector<16x384xbf16>, vector<384x128xbf16>, vector<16x128xf32> -> vector<16x128xf32>
    %cst_26 = arith.constant 9.99999974E-6 : f32
    %36 = vector.broadcast %cst_26 : f32 to vector<16x128xf32>
    %37 = arith.maximumf %35, %36 : vector<16x128xf32>
    %38 = math.log %37 : vector<16x128xf32>
    %c0_27 = arith.constant 0 : index
    %c0_28 = arith.constant 0 : index
    %c0_29 = arith.constant 0 : index
    %39 = vector.load %arg4[%c0_27, %c0_28, %c0_29] : memref<1x16x128xf32, #tpu.memory_space<vmem>>, vector<1x16x128xf32>
    %40 = vector.shape_cast %39 : vector<1x16x128xf32> to vector<16x128xf32>
    %41 = vector.shape_cast %38 : vector<16x128xf32> to vector<1x16x128xf32>
    tpu.vector_store %arg4[%c0_27, %c0_28, %c0_29], %41 {strides = array<i32>} : memref<1x16x128xf32, #tpu.memory_space<vmem>>, vector<1x16x128xf32>,
    return
  }
  func.func @transform_0(%arg0: i32) -> (i32, i32, i32) {
    %c0_i32 = arith.constant 0 : i32
    %c0_i32_0 = arith.constant 0 : i32
    %c0_i32_1 = arith.constant 0 : i32
    return %arg0, %c0_i32, %c0_i32_0 : i32, i32, i32
  }
  func.func @transform_1(%arg0: i32) -> (i32, i32, i32) {
    %c0_i32 = arith.constant 0 : i32
    %c0_i32_0 = arith.constant 0 : i32
    %c0_i32_1 = arith.constant 0 : i32
    %c0_i32_2 = arith.constant 0 : i32
    return %c0_i32, %c0_i32_0, %c0_i32_1 : i32, i32, i32
  }
  func.func @transform_2(%arg0: i32) -> (i32, i32) {
    %c0_i32 = arith.constant 0 : i32
    %c0_i32_0 = arith.constant 0 : i32
    %c0_i32_1 = arith.constant 0 : i32
    return %c0_i32, %c0_i32_0 : i32, i32
  }
  func.func @transform_3(%arg0: i32) -> (i32, i32, i32) {
    %c0_i32 = arith.constant 0 : i32
    %c0_i32_0 = arith.constant 0 : i32
    %c0_i32_1 = arith.constant 0 : i32
    return %arg0, %c0_i32, %c0_i32_0 : i32, i32, i32
  }
}

</mosaic_0001>

<bundles_post_ra>
// kernel: audio_to_mel.1
= control target key start
LH: loop header
LB: loop body
LE: loop exit
PB: predicated region body
PF: predicated region fallthrough
CT: control target
= control target key end

     0   :  { %s4981_s12 = smov 0   ;;  %s6333_s0 = inlined_call_operand.vmem [shape: f32[2,24,256], index: 0, kind: input, shape index: {}]   ;;  %s6334_s1 = inlined_call_operand.vmem [shape: bf16[4,256,768], index: 1, kind: input, shape index: {}]   ;;  %s6335_s2 = inlined_call_operand.vmem [shape: bf16[384,128], index: 2, kind: input, shape index: {}]   ;;  %s6336_s3 = inlined_call_operand.vmem [shape: f32[2,16,128], index: 3, kind: output, shape index: {}]  }
   0x1 LB: > { %s3528_s13 = sadd.s32 4294967295, %s4957_s12   ;;  %p3532_p0 = scmp.ge.s32.totalorder %s4957_s12, 1  ;;  %s4957_s12 = sphi %s4981_s12, %s13_s12  }
   0x2   : > { %p137_p1 = scmp.lt.s32.totalorder %s4957_s12, 3 }
   0x4   : > { %p138_p2 = pnand %p3532_p0, %p137_p1 }
   0x5   : > { %v4333_v0 = vld [vmem:[%s6334_s1 + $0x304] ss:$24 sps:$4 sm:$0xff] (!%p138_p2)   ;;  %v4335_v1 = vld [vmem:[%s6334_s1 + $0x314] ss:$24 sps:$4 sm:$0xff] (!%p138_p2)   ;;  %v4337_v2 = vld [vmem:[%s6334_s1 + $0x300] ss:$24 sps:$4 sm:$0xff] (!%p138_p2)  }
   0x6   : > { %141 = sbr.rel (%p138_p2) target bundleno = 954 (0x3ba), region = 32  ;;  %888 = vmatprep.subr.bf16.mxu1 (!%p138_p2), %v4333_v0  ;;  %v4338_v3 = vld [vmem:[%s6334_s1 + $0x310] ss:$24 sps:$4 sm:$0xff] (!%p138_p2)   ;;  %974 = vmatprep.subr.bf16.mxu0 (!%p138_p2), %v4335_v1  ;;  %v4339_v4 = vld [vmem:[%s6334_s1 + $0x334] ss:$24 sps:$4 sm:$0xff] (!%p138_p2)   ;;  %p161_p3 = scmp.lt.s32.totalorder (!%p138_p2), %s3528_s13, 1 }
   0x7   : > { %889 = vmatpush1.bf16.msra.mxu1 (!%p138_p2), %v4337_v2  ;;  %975 = vmatpush1.bf16.msra.mxu0 (!%p138_p2), %v4338_v3  ;;  %v4341_v5 = vld [vmem:[%s6334_s1 + $0x344] ss:$24 sps:$4 sm:$0xff] (!%p138_p2)   ;;  %v4343_v6 = vld [vmem:[%s6334_s1 + $0x330] ss:$24 sps:$4 sm:$0xff] (!%p138_p2)   ;;  %v4344_v7 = vld [vmem:[%s6334_s1 + $0x340] ss:$24 sps:$4 sm:$0xff] (!%p138_p2)  }
   0x8   : > { %890 = vmatprep.subr.bf16.mxu1 (!%p138_p2), %v4339_v4  ;;  %976 = vmatprep.subr.bf16.mxu0 (!%p138_p2), %v4341_v5  ;;  %v4345_v8 = vld [vmem:[%s6334_s1 + $0x364] ss:$24 sps:$4 sm:$0xff] (!%p138_p2)   ;;  %v4347_v9 = vld [vmem:[%s6334_s1 + $0x374] ss:$24 sps:$4 sm:$0xff] (!%p138_p2)   ;;  %v4349_v10 = vld [vmem:[%s6334_s1 + $0x360] ss:$24 sps:$4 sm:$0xff] (!%p138_p2)  }
   0x9   : > { %v4350_v11 = vld [vmem:[%s6334_s1 + $0x370] ss:$24 sps:$4 sm:$0xff] (!%p138_p2)   ;;  %v4351_v12 = vld [vmem:[%s6334_s1 + $0x394] ss:$24 sps:$4 sm:$0xff] (!%p138_p2)   ;;  %v4353_v13 = vld [vmem:[%s6334_s1 + $0x3a4] ss:$24 sps:$4 sm:$0xff] (!%p138_p2)  }
   0xa   : > { %v4355_v14 = vld [vmem:[%s6334_s1 + $0x390] ss:$24 sps:$4 sm:$0xff] (!%p138_p2)   ;;  %v4356_v15 = vld [vmem:[%s6334_s1 + $0x3a0] ss:$24 sps:$4 sm:$0xff] (!%p138_p2)   ;;  %v4357_v16 = vld [vmem:[%s6334_s1 + $0x3c4] ss:$24 sps:$4 sm:$0xff] (!%p138_p2)  }
   0xb   : > { %891 = vmatpush1.bf16.msra.mxu1 (!%p138_p2), %v4343_v6  ;;  %977 = vmatpush1.bf16.msra.mxu0 (!%p138_p2), %v4344_v7  ;;  %v4359_v17 = vld [vmem:[%s6334_s1 + $0x3d4] ss:$24 sps:$4 sm:$0xff] (!%p138_p2)   ;;  %v4361_v18 = vld [vmem:[%s6334_s1 + $0x3c0] ss:$24 sps:$4 sm:$0xff] (!%p138_p2)   ;;  %v4362_v19 = vld [vmem:[%s6334_s1 + $0x3d0] ss:$24 sps:$4 sm:$0xff] (!%p138_p2)  }
   0xc   : > { %892 = vmatprep.subr.bf16.mxu1 (!%p138_p2), %v4345_v8  ;;  %978 = vmatprep.subr.bf16.mxu0 (!%p138_p2), %v4347_v9  ;;  %v4363_v20 = vld [vmem:[%s6334_s1 + $0x3f4] ss:$24 sps:$4 sm:$0xff] (!%p138_p2)   ;;  %v4365_v21 = vld [vmem:[%s6334_s1 + $0x404] ss:$24 sps:$4 sm:$0xff] (!%p138_p2)   ;;  %v4367_v22 = vld [vmem:[%s6334_s1 + $0x3f0] ss:$24 sps:$4 sm:$0xff] (!%p138_p2)  }
   0xd   : > { %v4368_v23 = vld [vmem:[%s6334_s1 + $0x400] ss:$24 sps:$4 sm:$0xff]   ;;  %v4369_v24 = vld [vmem:[%s6334_s1 + $0x424] ss:$24 sps:$4 sm:$0xff]   ;;  %v4371_v25 = vld [vmem:[%s6334_s1 + $0x434] ss:$24 sps:$4 sm:$0xff]  }
   0xe   : > { %v4373_v26 = vld [vmem:[%s6334_s1 + $0x420] ss:$24 sps:$4 sm:$0xff]   ;;  %v4374_v27 = vld [vmem:[%s6334_s1 + $0x430] ss:$24 sps:$4 sm:$0xff]   ;;  %v4375_v28 = vld [vmem:[%s6334_s1 + $0x454] ss:$24 sps:$4 sm:$0xff]  }
   0xf   : > { %893 = vmatpush1.bf16.msra.mxu1 %v4349_v10  ;;  %979 = vmatpush1.bf16.msra.mxu0 %v4350_v11  ;;  %v4377_v29 = vld [vmem:[%s6334_s1 + $0x464] ss:$24 sps:$4 sm:$0xff]   ;;  %v4379_v30 = vld [vmem:[%s6334_s1 + $0x450] ss:$24 sps:$4 sm:$0xff]   ;;  %v4380_v31 = vld [vmem:[%s6334_s1 + $0x460] ss:$24 sps:$4 sm:$0xff]  }
  0x10   : > { %894 = vmatprep.subr.bf16.mxu1 %v4351_v12  ;;  %980 = vmatprep.subr.bf16.mxu0 %v4353_v13  ;;  %v4381_v32 = vld [vmem:[%s6334_s1 + $0x484] ss:$24 sps:$4 sm:$0xff]   ;;  %v4383_v33 = vld [vmem:[%s6334_s1 + $0x494] ss:$24 sps:$4 sm:$0xff]   ;;  %v4385_v34 = vld [vmem:[%s6334_s1 + $0x480] ss:$24 sps:$4 sm:$0xff]  }
  0x11   : > { %v4386_v35 = vld [vmem:[%s6334_s1 + $0x490] ss:$24 sps:$4 sm:$0xff]   ;;  %s6338_s13 = smov (!%p161_p3, %s3528_s13), 1  ;;  %v4387_v36 = vld [vmem:[%s6334_s1 + $0x4b4] ss:$24 sps:$4 sm:$0xff]   ;;  %vm1735_vm1 = vcmask 1046528  }
  0x12   : > { %v4389_v37 = vld [vmem:[%s6334_s1 + $0x4c4] ss:$24 sps:$4 sm:$0xff]   ;;  %v4391_v38 = vld [vmem:[%s6334_s1 + $0x4b0] ss:$24 sps:$4 sm:$0xff]   ;;  %s4322_s17 = smul.u32 48, %s6338_s13  ;;  %vm4960_vm15 = vmmov 0  }
  0x13   : > { %895 = vmatpush1.bf16.msra.mxu1 %v4355_v14  ;;  %981 = vmatpush1.bf16.msra.mxu0 %v4356_v15  ;;  %v4392_v39 = vld [vmem:[%s6334_s1 + $0x4c0] ss:$24 sps:$4 sm:$0xff]   ;;  %v4393_v40 = vld [vmem:[%s6334_s1 + $0x4e4] ss:$24 sps:$4 sm:$0xff]   ;;  %v4395_v41 = vld [vmem:[%s6334_s1 + $0x4f4] ss:$24 sps:$4 sm:$0xff]  }
  0x14   : > { %896 = vmatprep.subr.bf16.mxu1 %v4357_v16  ;;  %982 = vmatprep.subr.bf16.mxu0 %v4359_v17  ;;  %v4397_v42 = vld [vmem:[%s6334_s1 + $0x4e0] ss:$24 sps:$4 sm:$0xff]   ;;  %v4398_v43 = vld [vmem:[%s6334_s1 + $0x4f0] ss:$24 sps:$4 sm:$0xff]   ;;  %s5131_s30 = scalar_lea.vmem %s6333_s0, %s4322_s17  ;;  %v4399_v44 = vld [vmem:[%s6334_s1 + $0x514] ss:$24 sps:$4 sm:$0xff]  }
  0x15   : > { %v4401_v45 = vld [vmem:[%s6334_s1 + $0x524] ss:$24 sps:$4 sm:$0xff]   ;;  %v4403_v46 = vld [vmem:[%s6334_s1 + $0x510] ss:$24 sps:$4 sm:$0xff]   ;;  %v4404_v50 = vld [vmem:[%s6334_s1 + $0x520] ss:$24 sps:$4 sm:$0xff]  }
  0x16   : > { %v275_v47 = vld [vmem:[%s5131_s30 + $0x8] sm:$0xfe]  ;;  %v5144_v48 = vld [vmem:[%s5131_s30 + $0x18] sm:$0xff]  ;;  %v279_v49 = vld [vmem:[%s5131_s30 + $0x28] sm:$0x1]  ;;  %s4234_s4 = sshll.u32 %s6338_s13, 4 }
  0x17   : > { %897 = vmatpush1.bf16.msra.mxu1 %v4361_v18  ;;  %983 = vmatpush1.bf16.msra.mxu0 %v4362_v19  ;;  %v4405_v51 = vld [vmem:[%s6334_s1 + $0x544] ss:$24 sps:$4 sm:$0xff]   ;;  %v281_v52 = vpack.c.bf16 %v5144_v48, %v275_v47  ;;  %v283_v53 = vpack.c.bf16 %v279_v49, %v279_v49  ;;  %v4407_v54 = vld [vmem:[%s6334_s1 + $0x554] ss:$24 sps:$4 sm:$0xff]   ;;  %vm381_vm0 = vsmask.f32 7424  ;;  %s170_s6 = scalar_lea.vmem %s6336_s3, %s4234_s4 }
  0x18   : > { %898 = vmatprep.subr.bf16.mxu1 %v4363_v20  ;;  %984 = vmatprep.subr.bf16.mxu0 %v4365_v21  ;;  %v4409_v55 = vld [vmem:[%s6334_s1 + $0x540] ss:$24 sps:$4 sm:$0xff]   ;;  %v5161_v59 = vld [vmem:[%s5131_s30 + $0x10] sm:$0xff]  ;;  %v4413_v2 = vld [vmem:[%s6334_s1 + $0x584] ss:$24 sps:$4 sm:$0xff]  }
  0x19   : > { %v395_v56 = vshrl.u32 %v281_v52, 16  ;;  %v397_v57 = vshll.u32 %v281_v52, 16  ;;  %v402_v58 = vshll.u32 %v283_v53, 16  ;;  %v4410_v60 = vld [vmem:[%s6334_s1 + $0x550] ss:$24 sps:$4 sm:$0xff]  }
  0x1a   : > { %v274_v61 = vld [vmem:[%s5131_s30] sm:$0xfe]  ;;  %v4411_v62 = vld [vmem:[%s6334_s1 + $0x574] ss:$24 sps:$4 sm:$0xff]   ;;  %v278_v3 = vld [vmem:[%s5131_s30 + $0x20] sm:$0x1] }
  0x1b   : > { %899 = vmatpush1.bf16.msra.mxu1 %v4367_v22  ;;  %985 = vmatpush1.bf16.msra.mxu0 %v4368_v23  ;;  %v399_v63 = vrot.slane %v397_v57, 1  ;;  %v404_v0 = vrot.slane %v402_v58, 1  ;;  %v280_v1 = vpack.c.bf16 %v5161_v59, %v274_v61  ;;  %v4415_v5 = vld [vmem:[%s6334_s1 + $0x570] ss:$24 sps:$4 sm:$0xff]   ;;  %v4416_v6 = vld [vmem:[%s6334_s1 + $0x580] ss:$24 sps:$4 sm:$0xff]   ;;  %v282_v9 = vpack.c.bf16 %v278_v3, %v278_v3 }
  0x1c   : > { %900 = vmatprep.subr.bf16.mxu1 %v4369_v24  ;;  %986 = vmatprep.subr.bf16.mxu0 %v4371_v25  ;;  %v4417_v7 = vld [vmem:[%s6334_s1 + $0x5a4] ss:$24 sps:$4 sm:$0xff]   ;;  %v4419_v11 = vld [vmem:[%s6334_s1 + $0x5b4] ss:$24 sps:$4 sm:$0xff]   ;;  %v4421_v12 = vld [vmem:[%s6334_s1 + $0x5a0] ss:$24 sps:$4 sm:$0xff]  }
  0x1d   : > { %v400_v4 = vor.u32 %v399_v63, %v395_v56  ;;  %v385_v10 = vshll.u32 %v280_v1, 16  ;;  %v4422_v13 = vld [vmem:[%s6334_s1 + $0x5b0] ss:$24 sps:$4 sm:$0xff]   ;;  %v4423_v14 = vld [vmem:[%s6334_s1 + $0x5d4] ss:$24 sps:$4 sm:$0xff]   ;;  %v383_v15 = vshrl.u32 %v280_v1, 16 }
  0x1e   : > { %v390_v17 = vshll.u32 %v282_v9, 16  ;;  %v4425_v18 = vld [vmem:[%s6334_s1 + $0x5e4] ss:$24 sps:$4 sm:$0xff]   ;;  %v4427_v19 = vld [vmem:[%s6334_s1 + $0x5d0] ss:$24 sps:$4 sm:$0xff]  }
  0x1f   : > { %901 = vmatpush1.bf16.msra.mxu1 %v4373_v26  ;;  %987 = vmatpush1.bf16.msra.mxu0 %v4374_v27  ;;  %v405_v8 = vsel %vm381_vm0, %v400_v4, %v404_v0  ;;  %v387_v16 = vrot.slane %v385_v10, 1  ;;  %v4428_v20 = vld [vmem:[%s6334_s1 + $0x5e0] ss:$24 sps:$4 sm:$0xff]   ;;  %v4431_v21 = vld [vmem:[%s6334_s1 + $0x30c] ss:$24 sps:$4 sm:$0xff]  }
  0x20   : > { %902 = vmatprep.subr.bf16.mxu1 %v4375_v28  ;;  %988 = vmatprep.subr.bf16.mxu0 %v4377_v29  ;;  %v392_v23 = vrot.slane %v390_v17, 1  ;;  %v4434_v24 = vld [vmem:[%s6334_s1 + $0x4] ss:$24 sps:$4 sm:$0xff]   ;;  %v4429_v25 = vld [vmem:[%s6334_s1 + $0x308] ss:$24 sps:$4 sm:$0xff]  }
  0x21   : > { %920 = vmatprep.mubr.bf16.mxu1 %v405_v8  ;;  %1006 = vmatprep.mubr.bf16.mxu0 %v405_v8  ;;  %v388_v22 = vor.u32 %v387_v16, %v383_v15  ;;  %v4432_v26 = vld [vmem:[%s6334_s1] ss:$24 sps:$4 sm:$0xff]   ;;  %v4437_v28 = vld [vmem:[%s6334_s1 + $0x33c] ss:$24 sps:$4 sm:$0xff]   ;;  %v4462_v47 = vld [vmem:[%s6334_s1 + $0xf0] ss:$24 sps:$4 sm:$0xff]  }
  0x22   : > { %v4440_v29 = vld [vmem:[%s6334_s1 + $0x34] ss:$24 sps:$4 sm:$0xff]   ;;  %v4468_v52 = vld [vmem:[%s6334_s1 + $0x120] ss:$24 sps:$4 sm:$0xff]   ;;  %v4474_v58 = vld [vmem:[%s6334_s1 + $0x150] ss:$24 sps:$4 sm:$0xff]  }
  0x23   : > { %903 = vmatpush1.bf16.msra.mxu1 %v4379_v30  ;;  %989 = vmatpush1.bf16.msra.mxu0 %v4380_v31  ;;  %v5219_v27 = vsel %vm381_vm0, %v388_v22, %v392_v23  ;;  %v4435_v30 = vld [vmem:[%s6334_s1 + $0x338] ss:$24 sps:$4 sm:$0xff]   ;;  %v4467_v49 = vld [vmem:[%s6334_s1 + $0x42c] ss:$24 sps:$4 sm:$0xff]   ;;  %v4477_v61 = vld [vmem:[%s6334_s1 + $0x488] ss:$24 sps:$4 sm:$0xff]  }
  0x24   : > { %904 = vmatprep.subr.bf16.mxu1 %v4381_v32  ;;  %990 = vmatprep.subr.bf16.mxu0 %v4383_v33  ;;  %v4438_v31 = vld [vmem:[%s6334_s1 + $0x30] ss:$24 sps:$4 sm:$0xff]   ;;  %v4443_v32 = vld [vmem:[%s6334_s1 + $0x36c] ss:$24 sps:$4 sm:$0xff]   ;;  %v4485_v63 = vld [vmem:[%s6334_s1 + $0x4bc] ss:$24 sps:$4 sm:$0xff]  }
  0x25   : > { %v4446_v33 = vld [vmem:[%s6334_s1 + $0x64] ss:$24 sps:$4 sm:$0xff]   ;;  %v173_v53 = vld [vmem:[%s5131_s30 + $0x8] sm:$0xff]  ;;  %v4471_v57 = vld [vmem:[%s6334_s1 + $0x458] ss:$24 sps:$4 sm:$0xff]  }
  0x26   : > { %v5303_v56 = vpack.c.bf16 %v5144_v48, %v173_v53  ;;  %v4482_v48 = vld [vmem:[%s6334_s1 + $0x184] ss:$24 sps:$4 sm:$0xff]   ;;  %v4488_v0 = vld [vmem:[%s6334_s1 + $0x1b4] ss:$24 sps:$4 sm:$0xff]   ;;  %v4483_v1 = vld [vmem:[%s6334_s1 + $0x4b8] ss:$24 sps:$4 sm:$0xff]  }
  0x27   : > { %905 = vmatpush1.bf16.msra.mxu1 %v4385_v34  ;;  %991 = vmatpush1.bf16.msra.mxu0 %v4386_v35  ;;  %v4441_v34 = vld [vmem:[%s6334_s1 + $0x368] ss:$24 sps:$4 sm:$0xff]   ;;  %v4491_v3 = vld [vmem:[%s6334_s1 + $0x4ec] ss:$24 sps:$4 sm:$0xff]   ;;  %v4495_v9 = vld [vmem:[%s6334_s1 + $0x518] ss:$24 sps:$4 sm:$0xff]  }
  0x28   : > { %906 = vmatprep.subr.bf16.mxu1 %v4387_v36  ;;  %992 = vmatprep.subr.bf16.mxu0 %v4389_v37  ;;  %v4444_v35 = vld [vmem:[%s6334_s1 + $0x60] ss:$24 sps:$4 sm:$0xff]   ;;  %v4449_v36 = vld [vmem:[%s6334_s1 + $0x39c] ss:$24 sps:$4 sm:$0xff]   ;;  %v4498_v10 = vld [vmem:[%s6334_s1 + $0x210] ss:$24 sps:$4 sm:$0xff]  }
  0x29   : > { %v4452_v37 = vld [vmem:[%s6334_s1 + $0x94] ss:$24 sps:$4 sm:$0xff]   ;;  %v4494_v4 = vld [vmem:[%s6334_s1 + $0x1e4] ss:$24 sps:$4 sm:$0xff]   ;;  %v4507_v17 = vld [vmem:[%s6334_s1 + $0x578] ss:$24 sps:$4 sm:$0xff]  }
  0x2a   : > { %v4509_v15 = vld [vmem:[%s6334_s1 + $0x57c] ss:$24 sps:$4 sm:$0xff]   ;;  %v4516_v22 = vld [vmem:[%s6334_s1 + $0x2a0] ss:$24 sps:$4 sm:$0xff]   ;;  %v4563_v53 = vld [vmem:[%s6334_s1 + $0x12c] ss:$24 sps:$4 sm:$0xff]  }
  0x2b   : > { %907 = vmatpush1.bf16.msra.mxu1 %v4391_v38  ;;  %993 = vmatpush1.bf16.msra.mxu0 %v4392_v39  ;;  %v4447_v38 = vld [vmem:[%s6334_s1 + $0x398] ss:$24 sps:$4 sm:$0xff]   ;;  %v4512_v16 = vld [vmem:[%s6334_s1 + $0x274] ss:$24 sps:$4 sm:$0xff]   ;;  %vm2470_vm2 = vsmask.f32 6400 }
  0x2c   : > { %908 = vmatprep.subr.bf16.mxu1 %v4393_v40  ;;  %994 = vmatprep.subr.bf16.mxu0 %v4395_v41  ;;  %v4450_v39 = vld [vmem:[%s6334_s1 + $0x90] ss:$24 sps:$4 sm:$0xff]   ;;  %v4455_v40 = vld [vmem:[%s6334_s1 + $0x3cc] ss:$24 sps:$4 sm:$0xff]   ;;  %v4521_v23 = vld [vmem:[%s6334_s1 + $0x5dc] ss:$24 sps:$4 sm:$0xff]  }
  0x2d   : > { %v4458_v41 = vld [vmem:[%s6334_s1 + $0xc4] ss:$24 sps:$4 sm:$0xff]  }
  0x2f   : > { %909 = vmatpush1.bf16.msra.mxu1 %v4397_v42  ;;  %995 = vmatpush1.bf16.msra.mxu0 %v4398_v43  ;;  %v4453_v42 = vld [vmem:[%s6334_s1 + $0x3c8] ss:$24 sps:$4 sm:$0xff]  }
  0x30   : > { %910 = vmatprep.subr.bf16.mxu1 %v4399_v44  ;;  %996 = vmatprep.subr.bf16.mxu0 %v4401_v45  ;;  %v4456_v43 = vld [vmem:[%s6334_s1 + $0xc0] ss:$24 sps:$4 sm:$0xff]   ;;  %v4461_v44 = vld [vmem:[%s6334_s1 + $0x3fc] ss:$24 sps:$4 sm:$0xff]  }
  0x31   : > { %v4464_v45 = vld [vmem:[%s6334_s1 + $0xf4] ss:$24 sps:$4 sm:$0xff]  }
  0x33   : > { %911 = vmatpush1.bf16.msra.mxu1 %v4403_v46  ;;  %997 = vmatpush1.bf16.msra.mxu0 %v4404_v50  ;;  %v4459_v46 = vld [vmem:[%s6334_s1 + $0x3f8] ss:$24 sps:$4 sm:$0xff]   ;;  %v4470_v50 = vld [vmem:[%s6334_s1 + $0x124] ss:$24 sps:$4 sm:$0xff]  }
  0x34   : > { %912 = vmatprep.subr.bf16.mxu1 %v4405_v51  ;;  %998 = vmatprep.subr.bf16.mxu0 %v4407_v54  ;;  %v4465_v51 = vld [vmem:[%s6334_s1 + $0x428] ss:$24 sps:$4 sm:$0xff]   ;;  %v4473_v54 = vld [vmem:[%s6334_s1 + $0x45c] ss:$24 sps:$4 sm:$0xff]  }
  0x37   : > { %913 = vmatpush1.bf16.msra.mxu1 %v4409_v55  ;;  %999 = vmatpush1.bf16.msra.mxu0 %v4410_v60  ;;  %v4476_v55 = vld [vmem:[%s6334_s1 + $0x154] ss:$24 sps:$4 sm:$0xff]  }
  0x38   : > { %914 = vmatprep.subr.bf16.mxu1 %v4411_v62  ;;  %1000 = vmatprep.subr.bf16.mxu0 %v4413_v2  ;;  %v4479_v60 = vld [vmem:[%s6334_s1 + $0x48c] ss:$24 sps:$4 sm:$0xff]   ;;  %v4480_v62 = vld [vmem:[%s6334_s1 + $0x180] ss:$24 sps:$4 sm:$0xff]   ;;  %v4486_v2 = vld [vmem:[%s6334_s1 + $0x1b0] ss:$24 sps:$4 sm:$0xff]  }
  0x3b   : > { %915 = vmatpush1.bf16.msra.mxu1 %v4415_v5  ;;  %1001 = vmatpush1.bf16.msra.mxu0 %v4416_v6  ;;  %v4489_v5 = vld [vmem:[%s6334_s1 + $0x4e8] ss:$24 sps:$4 sm:$0xff]  }
  0x3c   : > { %916 = vmatprep.subr.bf16.mxu1 %v4417_v7  ;;  %1002 = vmatprep.subr.bf16.mxu0 %v4419_v11  ;;  %v4492_v6 = vld [vmem:[%s6334_s1 + $0x1e0] ss:$24 sps:$4 sm:$0xff]   ;;  %v4497_v7 = vld [vmem:[%s6334_s1 + $0x51c] ss:$24 sps:$4 sm:$0xff]   ;;  %v4503_v11 = vld [vmem:[%s6334_s1 + $0x54c] ss:$24 sps:$4 sm:$0xff]  }
  0x3f   : > { %917 = vmatpush1.bf16.msra.mxu1 %v4421_v12  ;;  %1003 = vmatpush1.bf16.msra.mxu0 %v4422_v13  ;;  %v4506_v12 = vld [vmem:[%s6334_s1 + $0x244] ss:$24 sps:$4 sm:$0xff]   ;;  %v4501_v13 = vld [vmem:[%s6334_s1 + $0x548] ss:$24 sps:$4 sm:$0xff]  }
  0x40   : > { %918 = vmatprep.subr.bf16.mxu1 %v4423_v14  ;;  %1004 = vmatprep.subr.bf16.mxu0 %v4425_v18  ;;  %v4504_v14 = vld [vmem:[%s6334_s1 + $0x240] ss:$24 sps:$4 sm:$0xff]   ;;  %v4510_v18 = vld [vmem:[%s6334_s1 + $0x270] ss:$24 sps:$4 sm:$0xff]  }
  0x43   : > { %919 = vmatpush1.bf16.msra.mxu1 %v4427_v19  ;;  %1005 = vmatpush1.bf16.msra.mxu0 %v4428_v20  ;;  %v4515_v19 = vld [vmem:[%s6334_s1 + $0x5ac] ss:$24 sps:$4 sm:$0xff]  }
  0x44   : > { %931 = vmatprep.subr.bf16.mxu1 %v4431_v21  ;;  %1497 = vmatprep.subr.bf16.mxu0 %v4434_v24  ;;  %v4518_v20 = vld [vmem:[%s6334_s1 + $0x2a4] ss:$24 sps:$4 sm:$0xff]   ;;  %v4513_v21 = vld [vmem:[%s6334_s1 + $0x5a8] ss:$24 sps:$4 sm:$0xff]   ;;  %v4524_v24 = vld [vmem:[%s6334_s1 + $0x2d4] ss:$24 sps:$4 sm:$0xff]  }
  0x46   : > { %921 = vmatmul.mubr.bf16.vlgmr.msra.gmra.mrb[0].mxu1 %v5219_v27  ;;  %1007 = vmatmul.mubr.bf16.vlgmr.msra.gmra.mrb[0].mxu0 %v5219_v27 }
  0x47   : > { %932 = vmatpush1.bf16.msra.mxu1 %v4429_v25  ;;  %1498 = vmatpush1.bf16.msra.mxu0 %v4432_v26  ;;  %v4519_v25 = vld [vmem:[%s6334_s1 + $0x5d8] ss:$24 sps:$4 sm:$0xff]  }
  0x48   : > { %933 = vmatprep.subr.bf16.mxu1 %v4437_v28  ;;  %1499 = vmatprep.subr.bf16.mxu0 %v4440_v29  ;;  %v4522_v26 = vld [vmem:[%s6334_s1 + $0x2d0] ss:$24 sps:$4 sm:$0xff]   ;;  %v172_v28 = vld [vmem:[%s5131_s30] sm:$0xff] }
  0x49   : > { %963 = vmatprep.mubr.bf16.mxu1 %v405_v8  ;;  %1529 = vmatprep.mubr.bf16.mxu0 %v5303_v56  ;;  %v4500_v8 = vld [vmem:[%s6334_s1 + $0x214] ss:$24 sps:$4 sm:$0xff]  }
  0x4a   : > { %v4527_v29 = vld [vmem:[%s6334_s1 + $0xc] ss:$24 sps:$4 sm:$0xff]  }
  0x4b   : > { %934 = vmatpush1.bf16.msra.mxu1 %v4435_v30  ;;  %1500 = vmatpush1.bf16.msra.mxu0 %v4438_v31  ;;  %v4530_v30 = vld [vmem:[%s6334_s1 + $0x14] ss:$24 sps:$4 sm:$0xff]   ;;  %v5416_v31 = vpack.c.bf16 %v5161_v59, %v172_v28  ;;  %v4536_v59 = vld [vmem:[%s6334_s1 + $0x44] ss:$24 sps:$4 sm:$0xff]   ;;  %v1629_v28 = vld [vmem:[%s5131_s30 + $0x28] sm:$0x3] }
  0x4c   : > { %935 = vmatprep.subr.bf16.mxu1 %v4443_v32  ;;  %1501 = vmatprep.subr.bf16.mxu0 %v4446_v33  ;;  %v4525_v32 = vld [vmem:[%s6334_s1 + $0x8] ss:$24 sps:$4 sm:$0xff]  }
  0x4d   : > { %v4528_v33 = vld [vmem:[%s6334_s1 + $0x10] ss:$24 sps:$4 sm:$0xff]  }
  0x4f   : > { %936 = vmatpush1.bf16.msra.mxu1 %v4441_v34  ;;  %1502 = vmatpush1.bf16.msra.mxu0 %v4444_v35  ;;  %v4533_v34 = vld [vmem:[%s6334_s1 + $0x3c] ss:$24 sps:$4 sm:$0xff]   ;;  %v4531_v35 = vld [vmem:[%s6334_s1 + $0x38] ss:$24 sps:$4 sm:$0xff]  }
  0x50   : > { %937 = vmatprep.subr.bf16.mxu1 %v4449_v36  ;;  %1503 = vmatprep.subr.bf16.mxu0 %v4452_v37  ;;  %v4534_v36 = vld [vmem:[%s6334_s1 + $0x40] ss:$24 sps:$4 sm:$0xff]   ;;  %v4539_v37 = vld [vmem:[%s6334_s1 + $0x6c] ss:$24 sps:$4 sm:$0xff]  }
  0x53   : > { %938 = vmatpush1.bf16.msra.mxu1 %v4447_v38  ;;  %1504 = vmatpush1.bf16.msra.mxu0 %v4450_v39  ;;  %v4537_v38 = vld [vmem:[%s6334_s1 + $0x68] ss:$24 sps:$4 sm:$0xff]  }
  0x54   : > { %939 = vmatprep.subr.bf16.mxu1 %v4455_v40  ;;  %1505 = vmatprep.subr.bf16.mxu0 %v4458_v41  ;;  %v4540_v39 = vld [vmem:[%s6334_s1 + $0x70] ss:$24 sps:$4 sm:$0xff]   ;;  %v4545_v40 = vld [vmem:[%s6334_s1 + $0x9c] ss:$24 sps:$4 sm:$0xff]  }
  0x55   : > { %v4548_v41 = vld [vmem:[%s6334_s1 + $0xa4] ss:$24 sps:$4 sm:$0xff]  }
  0x57   : > { %940 = vmatpush1.bf16.msra.mxu1 %v4453_v42  ;;  %1506 = vmatpush1.bf16.msra.mxu0 %v4456_v43  ;;  %v4543_v42 = vld [vmem:[%s6334_s1 + $0x98] ss:$24 sps:$4 sm:$0xff]  }
  0x58   : > { %941 = vmatprep.subr.bf16.mxu1 %v4461_v44  ;;  %1507 = vmatprep.subr.bf16.mxu0 %v4464_v45  ;;  %v4546_v43 = vld [vmem:[%s6334_s1 + $0xa0] ss:$24 sps:$4 sm:$0xff]   ;;  %v4551_v44 = vld [vmem:[%s6334_s1 + $0xcc] ss:$24 sps:$4 sm:$0xff]  }
  0x59   : > { %v4554_v45 = vld [vmem:[%s6334_s1 + $0xd4] ss:$24 sps:$4 sm:$0xff]  }
  0x5b   : > { %942 = vmatpush1.bf16.msra.mxu1 %v4459_v46  ;;  %1508 = vmatpush1.bf16.msra.mxu0 %v4462_v47  ;;  %v4549_v46 = vld [vmem:[%s6334_s1 + $0xc8] ss:$24 sps:$4 sm:$0xff]  }
  0x5c   : > { %943 = vmatprep.subr.bf16.mxu1 %v4467_v49  ;;  %1509 = vmatprep.subr.bf16.mxu0 %v4470_v50  ;;  %v4552_v47 = vld [vmem:[%s6334_s1 + $0xd0] ss:$24 sps:$4 sm:$0xff]   ;;  %v4557_v49 = vld [vmem:[%s6334_s1 + $0xfc] ss:$24 sps:$4 sm:$0xff]  }
  0x5d   : > { %v4560_v50 = vld [vmem:[%s6334_s1 + $0x104] ss:$24 sps:$4 sm:$0xff]  }
  0x5f   : > { %944 = vmatpush1.bf16.msra.mxu1 %v4465_v51  ;;  %1510 = vmatpush1.bf16.msra.mxu0 %v4468_v52  ;;  %v4555_v51 = vld [vmem:[%s6334_s1 + $0xf8] ss:$24 sps:$4 sm:$0xff]  }
  0x60   : > { %945 = vmatprep.subr.bf16.mxu1 %v4473_v54  ;;  %1511 = vmatprep.subr.bf16.mxu0 %v4476_v55  ;;  %v4558_v52 = vld [vmem:[%s6334_s1 + $0x100] ss:$24 sps:$4 sm:$0xff]   ;;  %v4566_v54 = vld [vmem:[%s6334_s1 + $0x134] ss:$24 sps:$4 sm:$0xff]  }
  0x61   : > { %v4561_v55 = vld [vmem:[%s6334_s1 + $0x128] ss:$24 sps:$4 sm:$0xff]  }
  0x63   : > { %946 = vmatpush1.bf16.msra.mxu1 %v4471_v57  ;;  %1512 = vmatpush1.bf16.msra.mxu0 %v4474_v58  ;;  %v4569_v57 = vld [vmem:[%s6334_s1 + $0x15c] ss:$24 sps:$4 sm:$0xff]  }
  0x64   : > { %947 = vmatprep.subr.bf16.mxu1 %v4479_v60  ;;  %1513 = vmatprep.subr.bf16.mxu0 %v4482_v48  ;;  %v4572_v58 = vld [vmem:[%s6334_s1 + $0x164] ss:$24 sps:$4 sm:$0xff]   ;;  %v4567_v60 = vld [vmem:[%s6334_s1 + $0x158] ss:$24 sps:$4 sm:$0xff]  }
  0x65   : > { %v4570_v48 = vld [vmem:[%s6334_s1 + $0x160] ss:$24 sps:$4 sm:$0xff]  }
  0x67   : > { %948 = vmatpush1.bf16.msra.mxu1 %v4477_v61  ;;  %1514 = vmatpush1.bf16.msra.mxu0 %v4480_v62  ;;  %v4575_v61 = vld [vmem:[%s6334_s1 + $0x18c] ss:$24 sps:$4 sm:$0xff]  }
  0x68   : > { %949 = vmatprep.subr.bf16.mxu1 %v4485_v63  ;;  %1515 = vmatprep.subr.bf16.mxu0 %v4488_v0  ;;  %v4578_v62 = vld [vmem:[%s6334_s1 + $0x194] ss:$24 sps:$4 sm:$0xff]   ;;  %v4573_v63 = vld [vmem:[%s6334_s1 + $0x188] ss:$24 sps:$4 sm:$0xff]  }
  0x69   : > { %v4576_v0 = vld [vmem:[%s6334_s1 + $0x190] ss:$24 sps:$4 sm:$0xff]  }
  0x6b   : > { %950 = vmatpush1.bf16.msra.mxu1 %v4483_v1  ;;  %1516 = vmatpush1.bf16.msra.mxu0 %v4486_v2  ;;  %v4581_v1 = vld [vmem:[%s6334_s1 + $0x1bc] ss:$24 sps:$4 sm:$0xff]  }
  0x6c   : > { %951 = vmatprep.subr.bf16.mxu1 %v4491_v3  ;;  %1517 = vmatprep.subr.bf16.mxu0 %v4494_v4  ;;  %v4584_v2 = vld [vmem:[%s6334_s1 + $0x1c4] ss:$24 sps:$4 sm:$0xff]   ;;  %v4579_v3 = vld [vmem:[%s6334_s1 + $0x1b8] ss:$24 sps:$4 sm:$0xff]  }
  0x6d   : > { %v4582_v4 = vld [vmem:[%s6334_s1 + $0x1c0] ss:$24 sps:$4 sm:$0xff]  }
  0x6f   : > { %952 = vmatpush1.bf16.msra.mxu1 %v4489_v5  ;;  %1518 = vmatpush1.bf16.msra.mxu0 %v4492_v6  ;;  %v4587_v5 = vld [vmem:[%s6334_s1 + $0x1ec] ss:$24 sps:$4 sm:$0xff]  }
  0x70   : > { %953 = vmatprep.subr.bf16.mxu1 %v4497_v7  ;;  %1519 = vmatprep.subr.bf16.mxu0 %v4500_v8  ;;  %v4590_v6 = vld [vmem:[%s6334_s1 + $0x1f4] ss:$24 sps:$4 sm:$0xff]   ;;  %v4585_v7 = vld [vmem:[%s6334_s1 + $0x1e8] ss:$24 sps:$4 sm:$0xff]  }
  0x71   : > { %v4588_v8 = vld [vmem:[%s6334_s1 + $0x1f0] ss:$24 sps:$4 sm:$0xff]  }
  0x73   : > { %954 = vmatpush1.bf16.msra.mxu1 %v4495_v9  ;;  %1520 = vmatpush1.bf16.msra.mxu0 %v4498_v10  ;;  %v4593_v9 = vld [vmem:[%s6334_s1 + $0x21c] ss:$24 sps:$4 sm:$0xff]  }
  0x74   : > { %955 = vmatprep.subr.bf16.mxu1 %v4503_v11  ;;  %1521 = vmatprep.subr.bf16.mxu0 %v4506_v12  ;;  %v4596_v10 = vld [vmem:[%s6334_s1 + $0x224] ss:$24 sps:$4 sm:$0xff]   ;;  %v4591_v11 = vld [vmem:[%s6334_s1 + $0x218] ss:$24 sps:$4 sm:$0xff]  }
  0x75   : > { %v4594_v12 = vld [vmem:[%s6334_s1 + $0x220] ss:$24 sps:$4 sm:$0xff]  }
  0x77   : > { %956 = vmatpush1.bf16.msra.mxu1 %v4501_v13  ;;  %1522 = vmatpush1.bf16.msra.mxu0 %v4504_v14  ;;  %v4599_v13 = vld [vmem:[%s6334_s1 + $0x24c] ss:$24 sps:$4 sm:$0xff]  }
  0x78   : > { %957 = vmatprep.subr.bf16.mxu1 %v4509_v15  ;;  %1523 = vmatprep.subr.bf16.mxu0 %v4512_v16  ;;  %v4602_v14 = vld [vmem:[%s6334_s1 + $0x254] ss:$24 sps:$4 sm:$0xff]   ;;  %v4597_v15 = vld [vmem:[%s6334_s1 + $0x248] ss:$24 sps:$4 sm:$0xff]  }
  0x79   : > { %v4600_v16 = vld [vmem:[%s6334_s1 + $0x250] ss:$24 sps:$4 sm:$0xff]  }
  0x7b   : > { %958 = vmatpush1.bf16.msra.mxu1 %v4507_v17  ;;  %1524 = vmatpush1.bf16.msra.mxu0 %v4510_v18  ;;  %v4605_v17 = vld [vmem:[%s6334_s1 + $0x27c] ss:$24 sps:$4 sm:$0xff]  }
  0x7c   : > { %959 = vmatprep.subr.bf16.mxu1 %v4515_v19  ;;  %1525 = vmatprep.subr.bf16.mxu0 %v4518_v20  ;;  %v4608_v18 = vld [vmem:[%s6334_s1 + $0x284] ss:$24 sps:$4 sm:$0xff]   ;;  %v4603_v19 = vld [vmem:[%s6334_s1 + $0x278] ss:$24 sps:$4 sm:$0xff]  }
  0x7d   : > { %v4606_v20 = vld [vmem:[%s6334_s1 + $0x280] ss:$24 sps:$4 sm:$0xff]  }
  0x7f   : > { %960 = vmatpush1.bf16.msra.mxu1 %v4513_v21  ;;  %1526 = vmatpush1.bf16.msra.mxu0 %v4516_v22  ;;  %v4611_v21 = vld [vmem:[%s6334_s1 + $0x2ac] ss:$24 sps:$4 sm:$0xff]  }
  0x80   : > { %961 = vmatprep.subr.bf16.mxu1 %v4521_v23  ;;  %1527 = vmatprep.subr.bf16.mxu0 %v4524_v24  ;;  %v4614_v22 = vld [vmem:[%s6334_s1 + $0x2b4] ss:$24 sps:$4 sm:$0xff]   ;;  %v4609_v23 = vld [vmem:[%s6334_s1 + $0x2a8] ss:$24 sps:$4 sm:$0xff]  }
  0x81   : > { %v4612_v24 = vld [vmem:[%s6334_s1 + $0x2b0] ss:$24 sps:$4 sm:$0xff]  }
  0x83   : > { %962 = vmatpush1.bf16.msra.mxu1 %v4519_v25  ;;  %1528 = vmatpush1.bf16.msra.mxu0 %v4522_v26  ;;  %v4617_v25 = vld [vmem:[%s6334_s1 + $0x2dc] ss:$24 sps:$4 sm:$0xff]   ;;  %v1627_v26 = vld [vmem:[%s5131_s30 + $0x8] sm:$0xfc] }
  0x84   : > { %1540 = vmatprep.subr.bf16.mxu1 %v4527_v29  ;;  %1583 = vmatprep.subr.bf16.mxu0 %v4530_v30  ;;  %v4620_v29 = vld [vmem:[%s6334_s1 + $0x2e4] ss:$24 sps:$4 sm:$0xff]   ;;  %v4615_v30 = vld [vmem:[%s6334_s1 + $0x2d8] ss:$24 sps:$4 sm:$0xff]  }
  0x86   : > { %964 = vmatmul.mubr.bf16.vlgmr.msra.gmra.mrb[4].mxu1 %v5219_v27  ;;  %1530 = vmatmul.mubr.bf16.vlgmr.msra.gmra.mrb[4].mxu0 %v5416_v31  ;;  %v4542_v27 = vld [vmem:[%s6334_s1 + $0x74] ss:$24 sps:$4 sm:$0xff]  }
  0x87   : > { %1541 = vmatpush1.bf16.msra.mxu1 %v4525_v32  ;;  %1584 = vmatpush1.bf16.msra.mxu0 %v4528_v33  ;;  %v5608_v32 = vld [vmem:[%s5131_s30 + $0x18] sm:$0xff] }
  0x88   : > { %1542 = vmatprep.subr.bf16.mxu1 %v4533_v34  ;;  %1585 = vmatprep.subr.bf16.mxu0 %v4536_v59  ;;  %v1631_v33 = vpack.c.bf16 %v5608_v32, %v1627_v26  ;;  %v1633_v34 = vpack.c.bf16 %v1629_v28, %v1629_v28  ;;  %v4618_v59 = vld [vmem:[%s6334_s1 + $0x2e0] ss:$24 sps:$4 sm:$0xff]   ;;  %v4701_v26 = vld [vmem:[%s6334_s1 + $0x874] ss:$24 sps:$4 sm:$0xff]  }
  0x89   : > { %1572 = vmatprep.mubr.bf16.mxu1 %v5303_v56  ;;  %1615 = vmatprep.mubr.bf16.mxu0 %v5303_v56  ;;  %v4564_v56 = vld [vmem:[%s6334_s1 + $0x130] ss:$24 sps:$4 sm:$0xff]   ;;  %v4704_v28 = vld [vmem:[%s6334_s1 + $0x87c] ss:$24 sps:$4 sm:$0xff]  }
  0x8b   : > { %1543 = vmatpush1.bf16.msra.mxu1 %v4531_v35  ;;  %1586 = vmatpush1.bf16.msra.mxu0 %v4534_v36  ;;  %v4623_v35 = vld [vmem:[%s6334_s1 + $0x604] ss:$24 sps:$4 sm:$0xff]  }
  0x8c   : > { %1544 = vmatprep.subr.bf16.mxu1 %v4539_v37  ;;  %1587 = vmatprep.subr.bf16.mxu0 %v4542_v27  ;;  %v4626_v36 = vld [vmem:[%s6334_s1 + $0x60c] ss:$24 sps:$4 sm:$0xff]   ;;  %v4621_v37 = vld [vmem:[%s6334_s1 + $0x600] ss:$24 sps:$4 sm:$0xff]   ;;  %v1739_v27 = vrot.slane %v1631_v33, 1 }
  0x8d   : > { %v4702_v33 = vld [vmem:[%s6334_s1 + $0x878] ss:$24 sps:$4 sm:$0xff]  }
  0x8f   : > { %1545 = vmatpush1.bf16.msra.mxu1 %v4537_v38  ;;  %1588 = vmatpush1.bf16.msra.mxu0 %v4540_v39  ;;  %v1740_v38 = vrot.slane %v1633_v34, 1  ;;  %v4624_v39 = vld [vmem:[%s6334_s1 + $0x608] ss:$24 sps:$4 sm:$0xff]  }
  0x90   : > { %1546 = vmatprep.subr.bf16.mxu1 %v4545_v40  ;;  %1589 = vmatprep.subr.bf16.mxu0 %v4548_v41  ;;  %v4629_v40 = vld [vmem:[%s6334_s1 + $0x634] ss:$24 sps:$4 sm:$0xff]  }
  0x91   : > { %v4632_v41 = vld [vmem:[%s6334_s1 + $0x63c] ss:$24 sps:$4 sm:$0xff]  }
  0x93   : > { %1547 = vmatpush1.bf16.msra.mxu1 %v4543_v42  ;;  %1590 = vmatpush1.bf16.msra.mxu0 %v4546_v43  ;;  %v4627_v42 = vld [vmem:[%s6334_s1 + $0x630] ss:$24 sps:$4 sm:$0xff]   ;;  %v5638_v43 = vsel %vm1735_vm1, %v1739_v27, %v1740_v38  ;;  %v1628_v27 = vld [vmem:[%s5131_s30 + $0x20] sm:$0x3] }
  0x94   : > { %1548 = vmatprep.subr.bf16.mxu1 %v4551_v44  ;;  %1591 = vmatprep.subr.bf16.mxu0 %v4554_v45  ;;  %v4630_v44 = vld [vmem:[%s6334_s1 + $0x638] ss:$24 sps:$4 sm:$0xff]   ;;  %v4635_v45 = vld [vmem:[%s6334_s1 + $0x664] ss:$24 sps:$4 sm:$0xff]   ;;  %v4708_v38 = vld [vmem:[%s6334_s1 + $0x8a8] ss:$24 sps:$4 sm:$0xff]  }
  0x97   : > { %1549 = vmatpush1.bf16.msra.mxu1 %v4549_v46  ;;  %1592 = vmatpush1.bf16.msra.mxu0 %v4552_v47  ;;  %v4633_v46 = vld [vmem:[%s6334_s1 + $0x660] ss:$24 sps:$4 sm:$0xff]  }
  0x98   : > { %1550 = vmatprep.subr.bf16.mxu1 %v4557_v49  ;;  %1593 = vmatprep.subr.bf16.mxu0 %v4560_v50  ;;  %v4636_v47 = vld [vmem:[%s6334_s1 + $0x668] ss:$24 sps:$4 sm:$0xff]   ;;  %v4641_v49 = vld [vmem:[%s6334_s1 + $0x694] ss:$24 sps:$4 sm:$0xff]  }
  0x99   : > { %v4644_v50 = vld [vmem:[%s6334_s1 + $0x69c] ss:$24 sps:$4 sm:$0xff]  }
  0x9b   : > { %1551 = vmatpush1.bf16.msra.mxu1 %v4555_v51  ;;  %1594 = vmatpush1.bf16.msra.mxu0 %v4558_v52  ;;  %v4639_v51 = vld [vmem:[%s6334_s1 + $0x690] ss:$24 sps:$4 sm:$0xff]  }
  0x9c   : > { %1552 = vmatprep.subr.bf16.mxu1 %v4563_v53  ;;  %1595 = vmatprep.subr.bf16.mxu0 %v4566_v54  ;;  %v4642_v52 = vld [vmem:[%s6334_s1 + $0x698] ss:$24 sps:$4 sm:$0xff]   ;;  %v4647_v53 = vld [vmem:[%s6334_s1 + $0x6c4] ss:$24 sps:$4 sm:$0xff]  }
  0x9d   : > { %v4650_v54 = vld [vmem:[%s6334_s1 + $0x6cc] ss:$24 sps:$4 sm:$0xff]  }
  0x9f   : > { %1553 = vmatpush1.bf16.msra.mxu1 %v4561_v55  ;;  %1596 = vmatpush1.bf16.msra.mxu0 %v4564_v56  ;;  %v4645_v55 = vld [vmem:[%s6334_s1 + $0x6c0] ss:$24 sps:$4 sm:$0xff]  }
  0xa0   : > { %1554 = vmatprep.subr.bf16.mxu1 %v4569_v57  ;;  %1597 = vmatprep.subr.bf16.mxu0 %v4572_v58  ;;  %v4648_v56 = vld [vmem:[%s6334_s1 + $0x6c8] ss:$24 sps:$4 sm:$0xff]   ;;  %v4653_v57 = vld [vmem:[%s6334_s1 + $0x6f4] ss:$24 sps:$4 sm:$0xff]  }
  0xa1   : > { %v4656_v58 = vld [vmem:[%s6334_s1 + $0x6fc] ss:$24 sps:$4 sm:$0xff]  }
  0xa3   : > { %1555 = vmatpush1.bf16.msra.mxu1 %v4567_v60  ;;  %1598 = vmatpush1.bf16.msra.mxu0 %v4570_v48  ;;  %v4651_v60 = vld [vmem:[%s6334_s1 + $0x6f0] ss:$24 sps:$4 sm:$0xff]  }
  0xa4   : > { %1556 = vmatprep.subr.bf16.mxu1 %v4575_v61  ;;  %1599 = vmatprep.subr.bf16.mxu0 %v4578_v62  ;;  %v4654_v48 = vld [vmem:[%s6334_s1 + $0x6f8] ss:$24 sps:$4 sm:$0xff]   ;;  %v4659_v61 = vld [vmem:[%s6334_s1 + $0x724] ss:$24 sps:$4 sm:$0xff]  }
  0xa5   : > { %v4662_v62 = vld [vmem:[%s6334_s1 + $0x72c] ss:$24 sps:$4 sm:$0xff]  }
  0xa7   : > { %1557 = vmatpush1.bf16.msra.mxu1 %v4573_v63  ;;  %1600 = vmatpush1.bf16.msra.mxu0 %v4576_v0  ;;  %v4657_v63 = vld [vmem:[%s6334_s1 + $0x720] ss:$24 sps:$4 sm:$0xff]  }
  0xa8   : > { %1558 = vmatprep.subr.bf16.mxu1 %v4581_v1  ;;  %1601 = vmatprep.subr.bf16.mxu0 %v4584_v2  ;;  %v4660_v0 = vld [vmem:[%s6334_s1 + $0x728] ss:$24 sps:$4 sm:$0xff]   ;;  %v4665_v1 = vld [vmem:[%s6334_s1 + $0x754] ss:$24 sps:$4 sm:$0xff]  }
  0xa9   : > { %v4668_v2 = vld [vmem:[%s6334_s1 + $0x75c] ss:$24 sps:$4 sm:$0xff]  }
  0xab   : > { %1559 = vmatpush1.bf16.msra.mxu1 %v4579_v3  ;;  %1602 = vmatpush1.bf16.msra.mxu0 %v4582_v4  ;;  %v4663_v3 = vld [vmem:[%s6334_s1 + $0x750] ss:$24 sps:$4 sm:$0xff]  }
  0xac   : > { %1560 = vmatprep.subr.bf16.mxu1 %v4587_v5  ;;  %1603 = vmatprep.subr.bf16.mxu0 %v4590_v6  ;;  %v4666_v4 = vld [vmem:[%s6334_s1 + $0x758] ss:$24 sps:$4 sm:$0xff]   ;;  %v4671_v5 = vld [vmem:[%s6334_s1 + $0x784] ss:$24 sps:$4 sm:$0xff]  }
  0xad   : > { %v4674_v6 = vld [vmem:[%s6334_s1 + $0x78c] ss:$24 sps:$4 sm:$0xff]  }
  0xaf   : > { %1561 = vmatpush1.bf16.msra.mxu1 %v4585_v7  ;;  %1604 = vmatpush1.bf16.msra.mxu0 %v4588_v8  ;;  %v4669_v7 = vld [vmem:[%s6334_s1 + $0x780] ss:$24 sps:$4 sm:$0xff]  }
  0xb0   : > { %1562 = vmatprep.subr.bf16.mxu1 %v4593_v9  ;;  %1605 = vmatprep.subr.bf16.mxu0 %v4596_v10  ;;  %v4672_v8 = vld [vmem:[%s6334_s1 + $0x788] ss:$24 sps:$4 sm:$0xff]   ;;  %v4677_v9 = vld [vmem:[%s6334_s1 + $0x7b4] ss:$24 sps:$4 sm:$0xff]  }
  0xb1   : > { %v4680_v10 = vld [vmem:[%s6334_s1 + $0x7bc] ss:$24 sps:$4 sm:$0xff]  }
  0xb3   : > { %1563 = vmatpush1.bf16.msra.mxu1 %v4591_v11  ;;  %1606 = vmatpush1.bf16.msra.mxu0 %v4594_v12  ;;  %v4675_v11 = vld [vmem:[%s6334_s1 + $0x7b0] ss:$24 sps:$4 sm:$0xff]  }
  0xb4   : > { %1564 = vmatprep.subr.bf16.mxu1 %v4599_v13  ;;  %1607 = vmatprep.subr.bf16.mxu0 %v4602_v14  ;;  %v4678_v12 = vld [vmem:[%s6334_s1 + $0x7b8] ss:$24 sps:$4 sm:$0xff]   ;;  %v4683_v13 = vld [vmem:[%s6334_s1 + $0x7e4] ss:$24 sps:$4 sm:$0xff]  }
  0xb5   : > { %v4686_v14 = vld [vmem:[%s6334_s1 + $0x7ec] ss:$24 sps:$4 sm:$0xff]  }
  0xb7   : > { %1565 = vmatpush1.bf16.msra.mxu1 %v4597_v15  ;;  %1608 = vmatpush1.bf16.msra.mxu0 %v4600_v16  ;;  %v4681_v15 = vld [vmem:[%s6334_s1 + $0x7e0] ss:$24 sps:$4 sm:$0xff]  }
  0xb8   : > { %1566 = vmatprep.subr.bf16.mxu1 %v4605_v17  ;;  %1609 = vmatprep.subr.bf16.mxu0 %v4608_v18  ;;  %v4684_v16 = vld [vmem:[%s6334_s1 + $0x7e8] ss:$24 sps:$4 sm:$0xff]   ;;  %v4689_v17 = vld [vmem:[%s6334_s1 + $0x814] ss:$24 sps:$4 sm:$0xff]  }
  0xb9   : > { %v4692_v18 = vld [vmem:[%s6334_s1 + $0x81c] ss:$24 sps:$4 sm:$0xff]  }
  0xbb   : > { %1567 = vmatpush1.bf16.msra.mxu1 %v4603_v19  ;;  %1610 = vmatpush1.bf16.msra.mxu0 %v4606_v20  ;;  %v4687_v19 = vld [vmem:[%s6334_s1 + $0x810] ss:$24 sps:$4 sm:$0xff]  }
  0xbc   : > { %1568 = vmatprep.subr.bf16.mxu1 %v4611_v21  ;;  %1611 = vmatprep.subr.bf16.mxu0 %v4614_v22  ;;  %v4690_v20 = vld [vmem:[%s6334_s1 + $0x818] ss:$24 sps:$4 sm:$0xff]   ;;  %v4695_v21 = vld [vmem:[%s6334_s1 + $0x844] ss:$24 sps:$4 sm:$0xff]  }
  0xbd   : > { %v4698_v22 = vld [vmem:[%s6334_s1 + $0x84c] ss:$24 sps:$4 sm:$0xff]  }
  0xbf   : > { %1569 = vmatpush1.bf16.msra.mxu1 %v4609_v23  ;;  %1612 = vmatpush1.bf16.msra.mxu0 %v4612_v24  ;;  %v2366_v23 = vld [vmem:[%s5131_s30 + $0x8] sm:$0xf8]  ;;  %v4693_v24 = vld [vmem:[%s6334_s1 + $0x840] ss:$24 sps:$4 sm:$0xff]  }
  0xc0   : > { %1570 = vmatprep.subr.bf16.mxu1 %v4617_v25  ;;  %1613 = vmatprep.subr.bf16.mxu0 %v4620_v29  ;;  %v4696_v25 = vld [vmem:[%s6334_s1 + $0x848] ss:$24 sps:$4 sm:$0xff]   ;;  %v2370_v34 = vpack.c.bf16 %v5608_v32, %v2366_v23 }
  0xc1   : > { %v2368_v29 = vld [vmem:[%s5131_s30 + $0x28] sm:$0x7]  ;;  %v4705_v32 = vld [vmem:[%s6334_s1 + $0x8a0] ss:$24 sps:$4 sm:$0xff]  }
  0xc3   : > { %1571 = vmatpush1.bf16.msra.mxu1 %v4615_v30  ;;  %1614 = vmatpush1.bf16.msra.mxu0 %v4618_v59  ;;  %v4699_v30 = vld [vmem:[%s6334_s1 + $0x870] ss:$24 sps:$4 sm:$0xff]   ;;  %v4707_v59 = vld [vmem:[%s6334_s1 + $0x8a4] ss:$24 sps:$4 sm:$0xff]  }
  0xc4   : > { %2224 = vmatprep.subr.bf16.mxu0 %v4623_v35  ;;  %2267 = vmatprep.subr.bf16.mxu1 %v4626_v36  ;;  %v4710_v35 = vld [vmem:[%s6334_s1 + $0x8ac] ss:$24 sps:$4 sm:$0xff]   ;;  %v2372_v36 = vpack.c.bf16 %v2368_v29, %v2368_v29  ;;  %v4764_v29 = vld [vmem:[%s6334_s1 + $0xa5c] ss:$24 sps:$4 sm:$0xff]  }
  0xc6   : > { %1573 = vmatmul.mubr.bf16.vlgmr.msra.gmra.mrb[4].mxu1 %v5416_v31  ;;  %1616 = vmatmul.mubr.bf16.vlgmr.msra.gmra.mrb[0].mxu0 %v5416_v31  ;;  %v4638_v31 = vld [vmem:[%s6334_s1 + $0x66c] ss:$24 sps:$4 sm:$0xff]  }
  0xc7   : > { %2225 = vmatpush1.bf16.msra.mxu0 %v4621_v37  ;;  %2268 = vmatpush1.bf16.msra.mxu1 %v4624_v39  ;;  %v1626_v37 = vld [vmem:[%s5131_s30] sm:$0xfc]  ;;  %v2489_v39 = vshrl.u32 %v2370_v34, 16 }
  0xc8   : > { %2226 = vmatprep.subr.bf16.mxu0 %v4629_v40  ;;  %2269 = vmatprep.subr.bf16.mxu1 %v4632_v41  ;;  %v2492_v40 = vshll.u32 %v2370_v34, 16  ;;  %v2497_v41 = vshrl.u32 %v2372_v36, 16  ;;  %v4762_v34 = vld [vmem:[%s6334_s1 + $0xa58] ss:$24 sps:$4 sm:$0xff]  }
  0xc9   : > { %2256 = vmatprep.mubr.bf16.mxu0 %v5638_v43  ;;  %2299 = vmatprep.mubr.bf16.mxu1 %v5638_v43 }
  0xcb   : > { %2227 = vmatpush1.bf16.msra.mxu0 %v4627_v42  ;;  %2270 = vmatpush1.bf16.msra.mxu1 %v4630_v44  ;;  %v2500_v42 = vshll.u32 %v2372_v36, 16  ;;  %v4713_v44 = vld [vmem:[%s6334_s1 + $0x8d4] ss:$24 sps:$4 sm:$0xff]   ;;  %v4765_v36 = vld [vmem:[%s6334_s1 + $0x790] ss:$24 sps:$4 sm:$0xff]  }
  0xcc   : > { %2228 = vmatprep.subr.bf16.mxu0 %v4635_v45  ;;  %2271 = vmatprep.subr.bf16.mxu1 %v4638_v31  ;;  %v4716_v45 = vld [vmem:[%s6334_s1 + $0x8dc] ss:$24 sps:$4 sm:$0xff]  }
  0xcd   : > { %v5813_v31 = vld [vmem:[%s5131_s30 + $0x10] sm:$0xff] }
  0xcf   : > { %2229 = vmatpush1.bf16.msra.mxu0 %v4633_v46  ;;  %2272 = vmatpush1.bf16.msra.mxu1 %v4636_v47  ;;  %v1630_v46 = vpack.c.bf16 %v5813_v31, %v1626_v37  ;;  %v1632_v47 = vpack.c.bf16 %v1628_v27, %v1628_v27  ;;  %v4768_v37 = vld [vmem:[%s6334_s1 + $0xa88] ss:$24 sps:$4 sm:$0xff]   ;;  %v4773_v27 = vld [vmem:[%s6334_s1 + $0x7c4] ss:$24 sps:$4 sm:$0xff]  }
  0xd0   : > { %2230 = vmatprep.subr.bf16.mxu0 %v4641_v49  ;;  %2273 = vmatprep.subr.bf16.mxu1 %v4644_v50  ;;  %v4711_v49 = vld [vmem:[%s6334_s1 + $0x8d0] ss:$24 sps:$4 sm:$0xff]  }
  0xd1   : > { %v4714_v50 = vld [vmem:[%s6334_s1 + $0x8d8] ss:$24 sps:$4 sm:$0xff]  }
  0xd3   : > { %2231 = vmatpush1.bf16.msra.mxu0 %v4639_v51  ;;  %2274 = vmatpush1.bf16.msra.mxu1 %v4642_v52  ;;  %v2491_v51 = vrot.slane %v2489_v39, 1  ;;  %v4719_v52 = vld [vmem:[%s6334_s1 + $0x614] ss:$24 sps:$4 sm:$0xff]   ;;  %v4774_v39 = vld [vmem:[%s6334_s1 + $0xab8] ss:$24 sps:$4 sm:$0xff]  }
  0xd4   : > { %2232 = vmatprep.subr.bf16.mxu0 %v4647_v53  ;;  %2275 = vmatprep.subr.bf16.mxu1 %v4650_v54  ;;  %v2494_v53 = vrot.slane %v2492_v40, 2  ;;  %v2499_v54 = vrot.slane %v2497_v41, 1  ;;  %v4779_v40 = vld [vmem:[%s6334_s1 + $0x7f4] ss:$24 sps:$4 sm:$0xff]  }
  0xd5   : > { %v4782_v41 = vld [vmem:[%s6334_s1 + $0xaec] ss:$24 sps:$4 sm:$0xff]  }
  0xd7   : > { %2233 = vmatpush1.bf16.msra.mxu0 %v4645_v55  ;;  %2276 = vmatpush1.bf16.msra.mxu1 %v4648_v56  ;;  %v2502_v55 = vrot.slane %v2500_v42, 2  ;;  %v4722_v56 = vld [vmem:[%s6334_s1 + $0x90c] ss:$24 sps:$4 sm:$0xff]   ;;  %v4777_v42 = vld [vmem:[%s6334_s1 + $0x7f0] ss:$24 sps:$4 sm:$0xff]  }
  0xd8   : > { %2234 = vmatprep.subr.bf16.mxu0 %v4653_v57  ;;  %2277 = vmatprep.subr.bf16.mxu1 %v4656_v58  ;;  %v1736_v57 = vrot.slane %v1630_v46, 1  ;;  %v1737_v58 = vrot.slane %v1632_v47, 1  ;;  %v4788_v46 = vld [vmem:[%s6334_s1 + $0xb1c] ss:$24 sps:$4 sm:$0xff]   ;;  %v4783_v47 = vld [vmem:[%s6334_s1 + $0x820] ss:$24 sps:$4 sm:$0xff]  }
  0xdb   : > { %2235 = vmatpush1.bf16.msra.mxu0 %v4651_v60  ;;  %2278 = vmatpush1.bf16.msra.mxu1 %v4654_v48  ;;  %v4717_v60 = vld [vmem:[%s6334_s1 + $0x610] ss:$24 sps:$4 sm:$0xff]  }
  0xdc   : > { %2236 = vmatprep.subr.bf16.mxu0 %v4659_v61  ;;  %2279 = vmatprep.subr.bf16.mxu1 %v4662_v62  ;;  %v4720_v48 = vld [vmem:[%s6334_s1 + $0x908] ss:$24 sps:$4 sm:$0xff]   ;;  %v4725_v61 = vld [vmem:[%s6334_s1 + $0x644] ss:$24 sps:$4 sm:$0xff]   ;;  %v2495_v62 = vor.u32 %v2494_v53, %v2491_v51 }
  0xdd   : > { %v4794_v51 = vld [vmem:[%s6334_s1 + $0xb4c] ss:$24 sps:$4 sm:$0xff]   ;;  %v2367_v53 = vld [vmem:[%s5131_s30 + $0x20] sm:$0x7] }
  0xdf   : > { %2237 = vmatpush1.bf16.msra.mxu0 %v4657_v63  ;;  %2280 = vmatpush1.bf16.msra.mxu1 %v4660_v0  ;;  %v2503_v63 = vor.u32 %v2502_v55, %v2499_v54  ;;  %v5838_v0 = vsel %vm1735_vm1, %v1736_v57, %v1737_v58  ;;  %v4789_v54 = vld [vmem:[%s6334_s1 + $0x850] ss:$24 sps:$4 sm:$0xff]   ;;  %v2371_v57 = vpack.c.bf16 %v2367_v53, %v2367_v53  ;;  %v4797_v58 = vld [vmem:[%s6334_s1 + $0x884] ss:$24 sps:$4 sm:$0xff]  }
  0xe0   : > { %2238 = vmatprep.subr.bf16.mxu0 %v4665_v1  ;;  %2281 = vmatprep.subr.bf16.mxu1 %v4668_v2  ;;  %v4728_v1 = vld [vmem:[%s6334_s1 + $0x93c] ss:$24 sps:$4 sm:$0xff]   ;;  %v4723_v2 = vld [vmem:[%s6334_s1 + $0x640] ss:$24 sps:$4 sm:$0xff]   ;;  %v4858_v53 = vld [vmem:[%s6334_s1 + $0xbd0] ss:$24 sps:$4 sm:$0xff]  }
  0xe1   : > { %v4792_v55 = vld [vmem:[%s6334_s1 + $0xb48] ss:$24 sps:$4 sm:$0xff]  }
  0xe3   : > { %2239 = vmatpush1.bf16.msra.mxu0 %v4663_v3  ;;  %2282 = vmatpush1.bf16.msra.mxu1 %v4666_v4  ;;  %v4726_v3 = vld [vmem:[%s6334_s1 + $0x938] ss:$24 sps:$4 sm:$0xff]   ;;  %v5852_v4 = vsel %vm2470_vm2, %v2495_v62, %v2503_v63  ;;  %v2480_v63 = vshrl.u32 %v2371_v57, 16 }
  0xe4   : > { %2240 = vmatprep.subr.bf16.mxu0 %v4671_v5  ;;  %2283 = vmatprep.subr.bf16.mxu1 %v4674_v6  ;;  %v4731_v5 = vld [vmem:[%s6334_s1 + $0x674] ss:$24 sps:$4 sm:$0xff]  }
  0xe5   : > { %v4734_v6 = vld [vmem:[%s6334_s1 + $0x96c] ss:$24 sps:$4 sm:$0xff]  }
  0xe7   : > { %2241 = vmatpush1.bf16.msra.mxu0 %v4669_v7  ;;  %2284 = vmatpush1.bf16.msra.mxu1 %v4672_v8  ;;  %v4729_v7 = vld [vmem:[%s6334_s1 + $0x670] ss:$24 sps:$4 sm:$0xff]  }
  0xe8   : > { %2242 = vmatprep.subr.bf16.mxu0 %v4677_v9  ;;  %2285 = vmatprep.subr.bf16.mxu1 %v4680_v10  ;;  %v4732_v8 = vld [vmem:[%s6334_s1 + $0x968] ss:$24 sps:$4 sm:$0xff]   ;;  %v4737_v9 = vld [vmem:[%s6334_s1 + $0x6a4] ss:$24 sps:$4 sm:$0xff]  }
  0xe9   : > { %v4740_v10 = vld [vmem:[%s6334_s1 + $0x99c] ss:$24 sps:$4 sm:$0xff]  }
  0xeb   : > { %2243 = vmatpush1.bf16.msra.mxu0 %v4675_v11  ;;  %2286 = vmatpush1.bf16.msra.mxu1 %v4678_v12  ;;  %v4735_v11 = vld [vmem:[%s6334_s1 + $0x6a0] ss:$24 sps:$4 sm:$0xff]   ;;  %v4743_v12 = vld [vmem:[%s6334_s1 + $0x6d4] ss:$24 sps:$4 sm:$0xff]  }
  0xec   : > { %2244 = vmatprep.subr.bf16.mxu0 %v4683_v13  ;;  %2287 = vmatprep.subr.bf16.mxu1 %v4686_v14  ;;  %v4746_v13 = vld [vmem:[%s6334_s1 + $0x9cc] ss:$24 sps:$4 sm:$0xff]   ;;  %v4741_v14 = vld [vmem:[%s6334_s1 + $0x6d0] ss:$24 sps:$4 sm:$0xff]  }
  0xef   : > { %2245 = vmatpush1.bf16.msra.mxu0 %v4681_v15  ;;  %2288 = vmatpush1.bf16.msra.mxu1 %v4684_v16  ;;  %v4744_v15 = vld [vmem:[%s6334_s1 + $0x9c8] ss:$24 sps:$4 sm:$0xff]   ;;  %v4749_v16 = vld [vmem:[%s6334_s1 + $0x704] ss:$24 sps:$4 sm:$0xff]  }
  0xf0   : > { %2246 = vmatprep.subr.bf16.mxu0 %v4689_v17  ;;  %2289 = vmatprep.subr.bf16.mxu1 %v4692_v18  ;;  %v4752_v17 = vld [vmem:[%s6334_s1 + $0x9fc] ss:$24 sps:$4 sm:$0xff]   ;;  %v4747_v18 = vld [vmem:[%s6334_s1 + $0x700] ss:$24 sps:$4 sm:$0xff]  }
  0xf3   : > { %2247 = vmatpush1.bf16.msra.mxu0 %v4687_v19  ;;  %2290 = vmatpush1.bf16.msra.mxu1 %v4690_v20  ;;  %v4750_v19 = vld [vmem:[%s6334_s1 + $0x9f8] ss:$24 sps:$4 sm:$0xff]   ;;  %v4755_v20 = vld [vmem:[%s6334_s1 + $0x734] ss:$24 sps:$4 sm:$0xff]  }
  0xf4   : > { %2248 = vmatprep.subr.bf16.mxu0 %v4695_v21  ;;  %2291 = vmatprep.subr.bf16.mxu1 %v4698_v22  ;;  %v4758_v21 = vld [vmem:[%s6334_s1 + $0xa2c] ss:$24 sps:$4 sm:$0xff]  }
  0xf7   : > { %2249 = vmatpush1.bf16.msra.mxu0 %v4693_v24  ;;  %2292 = vmatpush1.bf16.msra.mxu1 %v4696_v25  ;;  %v4753_v24 = vld [vmem:[%s6334_s1 + $0x730] ss:$24 sps:$4 sm:$0xff]  }
  0xf8   : > { %2250 = vmatprep.subr.bf16.mxu0 %v4701_v26  ;;  %2293 = vmatprep.subr.bf16.mxu1 %v4704_v28  ;;  %v4756_v25 = vld [vmem:[%s6334_s1 + $0xa28] ss:$24 sps:$4 sm:$0xff]   ;;  %v4761_v28 = vld [vmem:[%s6334_s1 + $0x764] ss:$24 sps:$4 sm:$0xff]  }
  0xfb   : > { %2251 = vmatpush1.bf16.msra.mxu0 %v4699_v30  ;;  %2294 = vmatpush1.bf16.msra.mxu1 %v4702_v33  ;;  %v4759_v33 = vld [vmem:[%s6334_s1 + $0x760] ss:$24 sps:$4 sm:$0xff]  }
  0xfc   : > { %2252 = vmatprep.subr.bf16.mxu0 %v4707_v59  ;;  %2295 = vmatprep.subr.bf16.mxu1 %v4710_v35  ;;  %v4767_v59 = vld [vmem:[%s6334_s1 + $0x794] ss:$24 sps:$4 sm:$0xff]  }
  0xfd   : > { %v4770_v35 = vld [vmem:[%s6334_s1 + $0xa8c] ss:$24 sps:$4 sm:$0xff]  }
  0xff   : > { %2253 = vmatpush1.bf16.msra.mxu0 %v4705_v32  ;;  %2296 = vmatpush1.bf16.msra.mxu1 %v4708_v38  ;;  %v4776_v32 = vld [vmem:[%s6334_s1 + $0xabc] ss:$24 sps:$4 sm:$0xff]   ;;  %v4771_v38 = vld [vmem:[%s6334_s1 + $0x7c0] ss:$24 sps:$4 sm:$0xff]  }
 0x100   : > { %2254 = vmatprep.subr.bf16.mxu0 %v4713_v44  ;;  %2297 = vmatprep.subr.bf16.mxu1 %v4716_v45  ;;  %v4780_v44 = vld [vmem:[%s6334_s1 + $0xae8] ss:$24 sps:$4 sm:$0xff]   ;;  %v4785_v45 = vld [vmem:[%s6334_s1 + $0x824] ss:$24 sps:$4 sm:$0xff]  }
 0x103   : > { %2255 = vmatpush1.bf16.msra.mxu0 %v4711_v49  ;;  %2298 = vmatpush1.bf16.msra.mxu1 %v4714_v50  ;;  %v4786_v49 = vld [vmem:[%s6334_s1 + $0xb18] ss:$24 sps:$4 sm:$0xff]   ;;  %v4791_v50 = vld [vmem:[%s6334_s1 + $0x854] ss:$24 sps:$4 sm:$0xff]  }
 0x104   : > { %2310 = vmatprep.subr.bf16.mxu0 %v4719_v52  ;;  %3030 = vmatprep.subr.bf16.mxu1 %v4722_v56  ;;  %v2365_v52 = vld [vmem:[%s5131_s30] sm:$0xf8] }
 0x105   : > { %v2369_v56 = vpack.c.bf16 %v5813_v31, %v2365_v52  ;;  %v4798_v31 = vld [vmem:[%s6334_s1 + $0xb78] ss:$24 sps:$4 sm:$0xff]   ;;  %v4860_v52 = vld [vmem:[%s6334_s1 + $0xbd4] ss:$24 sps:$4 sm:$0xff]  }
 0x106   : > { %2257 = vmatmul.mubr.bf16.vlgmr.msra.gmra.mrb[4].mxu0 %v5838_v0  ;;  %2300 = vmatmul.mubr.bf16.vlgmr.msra.gmra.mrb[4].mxu1 %v5838_v0 }
 0x107   : > { %2311 = vmatpush1.bf16.msra.mxu0 %v4717_v60  ;;  %3031 = vmatpush1.bf16.msra.mxu1 %v4720_v48  ;;  %v4800_v60 = vld [vmem:[%s6334_s1 + $0xb7c] ss:$24 sps:$4 sm:$0xff]   ;;  %v4795_v48 = vld [vmem:[%s6334_s1 + $0x880] ss:$24 sps:$4 sm:$0xff]   ;;  %v2475_v62 = vshll.u32 %v2369_v56, 16 }
 0x108   : > { %2312 = vmatprep.subr.bf16.mxu0 %v4725_v61  ;;  %3032 = vmatprep.subr.bf16.mxu1 %v4728_v1  ;;  %v2472_v61 = vshrl.u32 %v2369_v56, 16  ;;  %v2483_v1 = vshll.u32 %v2371_v57, 16  ;;  %v4866_v56 = vld [vmem:[%s6334_s1 + $0x944] ss:$24 sps:$4 sm:$0xff]   ;;  %v4864_v57 = vld [vmem:[%s6334_s1 + $0x940] ss:$24 sps:$4 sm:$0xff]  }
 0x109   : > { %3062 = vmatprep.mubr.bf16.mxu1 %v5852_v4  ;;  %2342 = vmatprep.mubr.bf16.mxu0 %v5638_v43  ;;  %v4738_v43 = vld [vmem:[%s6334_s1 + $0x998] ss:$24 sps:$4 sm:$0xff]  }
 0x10b   : > { %2313 = vmatpush1.bf16.msra.mxu0 %v4723_v2  ;;  %3033 = vmatpush1.bf16.msra.mxu1 %v4726_v3  ;;  %v4803_v2 = vld [vmem:[%s6334_s1 + $0x8b4] ss:$24 sps:$4 sm:$0xff]  }
 0x10c   : > { %2314 = vmatprep.subr.bf16.mxu0 %v4731_v5  ;;  %3034 = vmatprep.subr.bf16.mxu1 %v4734_v6  ;;  %v4806_v3 = vld [vmem:[%s6334_s1 + $0xbac] ss:$24 sps:$4 sm:$0xff]   ;;  %v4801_v5 = vld [vmem:[%s6334_s1 + $0x8b0] ss:$24 sps:$4 sm:$0xff]  }
 0x10d   : > { %v4804_v6 = vld [vmem:[%s6334_s1 + $0xba8] ss:$24 sps:$4 sm:$0xff]  }
 0x10f   : > { %2315 = vmatpush1.bf16.msra.mxu0 %v4729_v7  ;;  %3035 = vmatpush1.bf16.msra.mxu1 %v4732_v8  ;;  %v2474_v7 = vrot.slane %v2472_v61, 1  ;;  %v2477_v8 = vrot.slane %v2475_v62, 2  ;;  %v4873_v61 = vld [vmem:[%s6334_s1 + $0x9d0] ss:$24 sps:$4 sm:$0xff]   ;;  %v4878_v62 = vld [vmem:[%s6334_s1 + $0xa04] ss:$24 sps:$4 sm:$0xff]  }
 0x110   : > { %2316 = vmatprep.subr.bf16.mxu0 %v4737_v9  ;;  %3036 = vmatprep.subr.bf16.mxu1 %v4740_v10  ;;  %v2482_v9 = vrot.slane %v2480_v63, 1  ;;  %v2485_v10 = vrot.slane %v2483_v1, 2  ;;  %v4876_v63 = vld [vmem:[%s6334_s1 + $0xa00] ss:$24 sps:$4 sm:$0xff]   ;;  %v4881_v1 = vld [vmem:[%s6334_s1 + $0xa34] ss:$24 sps:$4 sm:$0xff]  }
 0x113   : > { %2317 = vmatpush1.bf16.msra.mxu0 %v4735_v11  ;;  %3037 = vmatpush1.bf16.msra.mxu1 %v4738_v43  ;;  %v4809_v11 = vld [vmem:[%s6334_s1 + $0x8e4] ss:$24 sps:$4 sm:$0xff]  }
 0x114   : > { %2318 = vmatprep.subr.bf16.mxu0 %v4743_v12  ;;  %3038 = vmatprep.subr.bf16.mxu1 %v4746_v13  ;;  %v4812_v43 = vld [vmem:[%s6334_s1 + $0xbdc] ss:$24 sps:$4 sm:$0xff]   ;;  %v4807_v12 = vld [vmem:[%s6334_s1 + $0x8e0] ss:$24 sps:$4 sm:$0xff]  }
 0x115   : > { %v4810_v13 = vld [vmem:[%s6334_s1 + $0xbd8] ss:$24 sps:$4 sm:$0xff]  }
 0x117   : > { %2319 = vmatpush1.bf16.msra.mxu0 %v4741_v14  ;;  %3039 = vmatpush1.bf16.msra.mxu1 %v4744_v15  ;;  %v2478_v14 = vor.u32 %v2477_v8, %v2474_v7  ;;  %v2486_v15 = vor.u32 %v2485_v10, %v2482_v9  ;;  %v4885_v7 = vld [vmem:[%s6334_s1 + $0xa90] ss:$24 sps:$4 sm:$0xff]   ;;  %v4890_v8 = vld [vmem:[%s6334_s1 + $0xac4] ss:$24 sps:$4 sm:$0xff]   ;;  %v4888_v9 = vld [vmem:[%s6334_s1 + $0xac0] ss:$24 sps:$4 sm:$0xff]  }
 0x118   : > { %2320 = vmatprep.subr.bf16.mxu0 %v4749_v16  ;;  %3040 = vmatprep.subr.bf16.mxu1 %v4752_v17  ;;  %v4815_v16 = vld [vmem:[%s6334_s1 + $0x904] ss:$24 sps:$4 sm:$0xff]   ;;  %v4813_v17 = vld [vmem:[%s6334_s1 + $0x900] ss:$24 sps:$4 sm:$0xff]   ;;  %v4893_v10 = vld [vmem:[%s6334_s1 + $0xaf4] ss:$24 sps:$4 sm:$0xff]  }
 0x119   : > { %v5910_v22 = vpop.f32.mrb[0].mxu1 }
 0x11a   : > { %v5912_v23 = vpop.f32.mrb[1].mxu1 }
 0x11b   : > { %2321 = vmatpush1.bf16.msra.mxu0 %v4747_v18  ;;  %3041 = vmatpush1.bf16.msra.mxu1 %v4750_v19  ;;  %v5920_v26 = vpop.f32.mrb[2].mxu1  ;;  %v6042_v18 = vsel %vm2470_vm2, %v2478_v14, %v2486_v15  ;;  %v4818_v19 = vld [vmem:[%s6334_s1 + $0x934] ss:$24 sps:$4 sm:$0xff]   ;;  %v4897_v14 = vld [vmem:[%s6334_s1 + $0xb50] ss:$24 sps:$4 sm:$0xff]  }
 0x11c   : > { %2322 = vmatprep.subr.bf16.mxu0 %v4755_v20  ;;  %3042 = vmatprep.subr.bf16.mxu1 %v4758_v21  ;;  %v5928_v30 = vpop.f32.mrb[3].mxu1  ;;  %v4816_v20 = vld [vmem:[%s6334_s1 + $0x930] ss:$24 sps:$4 sm:$0xff]   ;;  %v4821_v21 = vld [vmem:[%s6334_s1 + $0x964] ss:$24 sps:$4 sm:$0xff]  }
 0x11d   : > { %v4902_v15 = vld [vmem:[%s6334_s1 + $0xb84] ss:$24 sps:$4 sm:$0xff]  }
 0x11f   : > { %2323 = vmatpush1.bf16.msra.mxu0 %v4753_v24  ;;  %3043 = vmatpush1.bf16.msra.mxu1 %v4756_v25  ;;  %v4819_v24 = vld [vmem:[%s6334_s1 + $0x960] ss:$24 sps:$4 sm:$0xff]   ;;  %v4822_v25 = vld [vmem:[%s6334_s1 + $0x990] ss:$24 sps:$4 sm:$0xff]  }
 0x120   : > { %2324 = vmatprep.subr.bf16.mxu0 %v4761_v28  ;;  %3044 = vmatprep.subr.bf16.mxu1 %v4764_v29  ;;  %v4827_v28 = vld [vmem:[%s6334_s1 + $0x9c4] ss:$24 sps:$4 sm:$0xff]   ;;  %v4825_v29 = vld [vmem:[%s6334_s1 + $0x9c0] ss:$24 sps:$4 sm:$0xff]  }
 0x123   : > { %2325 = vmatpush1.bf16.msra.mxu0 %v4759_v33  ;;  %3045 = vmatpush1.bf16.msra.mxu1 %v4762_v34  ;;  %v4830_v33 = vld [vmem:[%s6334_s1 + $0x9f4] ss:$24 sps:$4 sm:$0xff]   ;;  %v4828_v34 = vld [vmem:[%s6334_s1 + $0x9f0] ss:$24 sps:$4 sm:$0xff]  }
 0x124   : > { %2326 = vmatprep.subr.bf16.mxu0 %v4767_v59  ;;  %3046 = vmatprep.subr.bf16.mxu1 %v4770_v35  ;;  %v4833_v59 = vld [vmem:[%s6334_s1 + $0xa24] ss:$24 sps:$4 sm:$0xff]   ;;  %v4831_v35 = vld [vmem:[%s6334_s1 + $0xa20] ss:$24 sps:$4 sm:$0xff]  }
 0x127   : > { %2327 = vmatpush1.bf16.msra.mxu0 %v4765_v36  ;;  %3047 = vmatpush1.bf16.msra.mxu1 %v4768_v37  ;;  %v4836_v36 = vld [vmem:[%s6334_s1 + $0xa54] ss:$24 sps:$4 sm:$0xff]   ;;  %v4834_v37 = vld [vmem:[%s6334_s1 + $0xa50] ss:$24 sps:$4 sm:$0xff]  }
 0x128   : > { %2328 = vmatprep.subr.bf16.mxu0 %v4773_v27  ;;  %3048 = vmatprep.subr.bf16.mxu1 %v4776_v32  ;;  %v4839_v27 = vld [vmem:[%s6334_s1 + $0xa84] ss:$24 sps:$4 sm:$0xff]   ;;  %v4837_v32 = vld [vmem:[%s6334_s1 + $0xa80] ss:$24 sps:$4 sm:$0xff]  }
 0x12b   : > { %2329 = vmatpush1.bf16.msra.mxu0 %v4771_v38  ;;  %3049 = vmatpush1.bf16.msra.mxu1 %v4774_v39  ;;  %v4842_v38 = vld [vmem:[%s6334_s1 + $0xab4] ss:$24 sps:$4 sm:$0xff]   ;;  %v4840_v39 = vld [vmem:[%s6334_s1 + $0xab0] ss:$24 sps:$4 sm:$0xff]  }
 0x12c   : > { %2330 = vmatprep.subr.bf16.mxu0 %v4779_v40  ;;  %3050 = vmatprep.subr.bf16.mxu1 %v4782_v41  ;;  %v4845_v40 = vld [vmem:[%s6334_s1 + $0xae4] ss:$24 sps:$4 sm:$0xff]   ;;  %v4843_v41 = vld [vmem:[%s6334_s1 + $0xae0] ss:$24 sps:$4 sm:$0xff]  }
 0x12f   : > { %2331 = vmatpush1.bf16.msra.mxu0 %v4777_v42  ;;  %3051 = vmatpush1.bf16.msra.mxu1 %v4780_v44  ;;  %v4848_v42 = vld [vmem:[%s6334_s1 + $0xb14] ss:$24 sps:$4 sm:$0xff]   ;;  %v4846_v44 = vld [vmem:[%s6334_s1 + $0xb10] ss:$24 sps:$4 sm:$0xff]  }
 0x130   : > { %2332 = vmatprep.subr.bf16.mxu0 %v4785_v45  ;;  %3052 = vmatprep.subr.bf16.mxu1 %v4788_v46  ;;  %v4851_v45 = vld [vmem:[%s6334_s1 + $0xb44] ss:$24 sps:$4 sm:$0xff]   ;;  %v4849_v46 = vld [vmem:[%s6334_s1 + $0xb40] ss:$24 sps:$4 sm:$0xff]  }
 0x133   : > { %2333 = vmatpush1.bf16.msra.mxu0 %v4783_v47  ;;  %3053 = vmatpush1.bf16.msra.mxu1 %v4786_v49  ;;  %v4854_v47 = vld [vmem:[%s6334_s1 + $0xb74] ss:$24 sps:$4 sm:$0xff]   ;;  %v4852_v49 = vld [vmem:[%s6334_s1 + $0xb70] ss:$24 sps:$4 sm:$0xff]  }
 0x134   : > { %2334 = vmatprep.subr.bf16.mxu0 %v4791_v50  ;;  %3054 = vmatprep.subr.bf16.mxu1 %v4794_v51  ;;  %v4857_v50 = vld [vmem:[%s6334_s1 + $0xba4] ss:$24 sps:$4 sm:$0xff]   ;;  %v4855_v51 = vld [vmem:[%s6334_s1 + $0xba0] ss:$24 sps:$4 sm:$0xff]  }
 0x137   : > { %2335 = vmatpush1.bf16.msra.mxu0 %v4789_v54  ;;  %3055 = vmatpush1.bf16.msra.mxu1 %v4792_v55  ;;  %v4863_v54 = vld [vmem:[%s6334_s1 + $0x914] ss:$24 sps:$4 sm:$0xff]   ;;  %v4861_v55 = vld [vmem:[%s6334_s1 + $0x910] ss:$24 sps:$4 sm:$0xff]  }
 0x138   : > { %2336 = vmatprep.subr.bf16.mxu0 %v4797_v58  ;;  %3056 = vmatprep.subr.bf16.mxu1 %v4800_v60  ;;  %v4869_v58 = vld [vmem:[%s6334_s1 + $0x974] ss:$24 sps:$4 sm:$0xff]   ;;  %v4867_v60 = vld [vmem:[%s6334_s1 + $0x970] ss:$24 sps:$4 sm:$0xff]  }
 0x13b   : > { %2337 = vmatpush1.bf16.msra.mxu0 %v4795_v48  ;;  %3057 = vmatpush1.bf16.msra.mxu1 %v4798_v31  ;;  %v4872_v48 = vld [vmem:[%s6334_s1 + $0x9a4] ss:$24 sps:$4 sm:$0xff]   ;;  %v4875_v31 = vld [vmem:[%s6334_s1 + $0x9d4] ss:$24 sps:$4 sm:$0xff]  }
 0x13c   : > { %2338 = vmatprep.subr.bf16.mxu0 %v4803_v2  ;;  %3058 = vmatprep.subr.bf16.mxu1 %v4806_v3  ;;  %v4879_v2 = vld [vmem:[%s6334_s1 + $0xa30] ss:$24 sps:$4 sm:$0xff]   ;;  %v4884_v3 = vld [vmem:[%s6334_s1 + $0xa64] ss:$24 sps:$4 sm:$0xff]  }
 0x13f   : > { %2339 = vmatpush1.bf16.msra.mxu0 %v4801_v5  ;;  %3059 = vmatpush1.bf16.msra.mxu1 %v4804_v6  ;;  %v4882_v5 = vld [vmem:[%s6334_s1 + $0xa60] ss:$24 sps:$4 sm:$0xff]   ;;  %v4887_v6 = vld [vmem:[%s6334_s1 + $0xa94] ss:$24 sps:$4 sm:$0xff]  }
 0x140   : > { %2340 = vmatprep.subr.bf16.mxu0 %v4809_v11  ;;  %3060 = vmatprep.subr.bf16.mxu1 %v4812_v43  ;;  %v4891_v11 = vld [vmem:[%s6334_s1 + $0xaf0] ss:$24 sps:$4 sm:$0xff]   ;;  %v4896_v43 = vld [vmem:[%s6334_s1 + $0xb24] ss:$24 sps:$4 sm:$0xff]  }
 0x143   : > { %2341 = vmatpush1.bf16.msra.mxu0 %v4807_v12  ;;  %3061 = vmatpush1.bf16.msra.mxu1 %v4810_v13  ;;  %v4894_v12 = vld [vmem:[%s6334_s1 + $0xb20] ss:$24 sps:$4 sm:$0xff]   ;;  %v4899_v13 = vld [vmem:[%s6334_s1 + $0xb54] ss:$24 sps:$4 sm:$0xff]  }
 0x144   : > { %2987 = vmatprep.subr.bf16.mxu0 %v4815_v16  ;;  %v4900_v16 = vld [vmem:[%s6334_s1 + $0xb80] ss:$24 sps:$4 sm:$0xff]  }
 0x146   : > { %3063 = vmatmul.mubr.bf16.vlgmr.msra.gmra.mrb[4].mxu1 %v6042_v18  ;;  %2343 = vmatmul.mubr.bf16.vlgmr.msra.gmra.mrb[0].mxu0 %v5838_v0  ;;  %v4824_v0 = vld [vmem:[%s6334_s1 + $0x994] ss:$24 sps:$4 sm:$0xff]  }
 0x147   : > { %2988 = vmatpush1.bf16.msra.mxu0 %v4813_v17  ;;  %3019 = vmatprep.mubr.bf16.mxu0 %v5852_v4  ;;  %v4905_v17 = vld [vmem:[%s6334_s1 + $0xbb4] ss:$24 sps:$4 sm:$0xff]  }
 0x148   : > { %2989 = vmatprep.subr.bf16.mxu0 %v4818_v19  ;;  %v4903_v19 = vld [vmem:[%s6334_s1 + $0xbb0] ss:$24 sps:$4 sm:$0xff]  }
 0x14b   : > { %2990 = vmatpush1.bf16.msra.mxu0 %v4816_v20  ;;  %v4908_v20 = vld [vmem:[%s6334_s1 + $0xbe4] ss:$24 sps:$4 sm:$0xff]  }
 0x14c   : > { %2991 = vmatprep.subr.bf16.mxu0 %v4821_v21  ;;  %v4906_v21 = vld [vmem:[%s6334_s1 + $0xbe0] ss:$24 sps:$4 sm:$0xff]  }
 0x14f   : > { %2992 = vmatpush1.bf16.msra.mxu0 %v4819_v24  ;;  %v4909_v24 = vld [vmem:[%s6335_s2 + $0x40] sm:$0xff]  }
 0x150   : > { %2993 = vmatprep.subr.bf16.mxu0 %v4824_v0  ;;  %v4910_v0 = vld [vmem:[%s6335_s2] sm:$0xff]   ;;  %4235 = vmatprep.subr.bf16.mxu1 %v4909_v24 }
 0x151   : > { %4236 = vmatpush3.bf16.msra.mxu1 %v4910_v0 }
 0x153   : > { %2994 = vmatpush1.bf16.msra.mxu0 %v4822_v25  ;;  %v4911_v25 = vld [vmem:[%s6335_s2 + $0x48] sm:$0xff]  }
 0x154   : > { %2995 = vmatprep.subr.bf16.mxu0 %v4827_v28  ;;  %v4912_v28 = vld [vmem:[%s6335_s2 + $0x8] sm:$0xff]   ;;  %4237 = vmatprep.subr.bf16.mxu1 %v4911_v25 }
 0x155   : > { %4238 = vmatpush3.bf16.msra.mxu1 %v4912_v28 }
 0x157   : > { %2996 = vmatpush1.bf16.msra.mxu0 %v4825_v29  ;;  %v4914_v29 = vld [vmem:[%s6335_s2 + $0x10] sm:$0xff]  }
 0x158   : > { %2997 = vmatprep.subr.bf16.mxu0 %v4830_v33 }
 0x15b   : > { %2998 = vmatpush1.bf16.msra.mxu0 %v4828_v34 }
 0x15c   : > { %2999 = vmatprep.subr.bf16.mxu0 %v4833_v59 }
 0x15f   : > { %3000 = vmatpush1.bf16.msra.mxu0 %v4831_v35  ;;  %v4915_v35 = vld [vmem:[%s6335_s2 + $0x58] sm:$0xff]  }
 0x160   : > { %3001 = vmatprep.subr.bf16.mxu0 %v4836_v36 }
 0x163   : > { %3002 = vmatpush1.bf16.msra.mxu0 %v4834_v37  ;;  %v4916_v37 = vld [vmem:[%s6335_s2 + $0x18] sm:$0xff]  }
 0x164   : > { %3003 = vmatprep.subr.bf16.mxu0 %v4839_v27  ;;  %v4917_v27 = vld [vmem:[%s6335_s2 + $0x60] sm:$0xff]  }
 0x167   : > { %3004 = vmatpush1.bf16.msra.mxu0 %v4837_v32  ;;  %v4918_v32 = vld [vmem:[%s6335_s2 + $0x20] sm:$0xff]  }
 0x168   : > { %3005 = vmatprep.subr.bf16.mxu0 %v4842_v38  ;;  %v4919_v38 = vld [vmem:[%s6335_s2 + $0x68] sm:$0xff]  }
 0x16b   : > { %3006 = vmatpush1.bf16.msra.mxu0 %v4840_v39  ;;  %v4920_v39 = vld [vmem:[%s6335_s2 + $0x28] sm:$0xff]  }
 0x16c   : > { %3007 = vmatprep.subr.bf16.mxu0 %v4845_v40  ;;  %v4921_v40 = vld [vmem:[%s6335_s2 + $0x70] sm:$0xff]  }
 0x16f   : > { %3008 = vmatpush1.bf16.msra.mxu0 %v4843_v41  ;;  %v4922_v41 = vld [vmem:[%s6335_s2 + $0x30] sm:$0xff]  }
 0x170   : > { %3009 = vmatprep.subr.bf16.mxu0 %v4848_v42  ;;  %v4923_v42 = vld [vmem:[%s6335_s2 + $0x78] sm:$0xff]  }
 0x173   : > { %3010 = vmatpush1.bf16.msra.mxu0 %v4846_v44  ;;  %v4924_v44 = vld [vmem:[%s6335_s2 + $0x38] sm:$0xff]  }
 0x174   : > { %3011 = vmatprep.subr.bf16.mxu0 %v4851_v45  ;;  %v4959_v45 = vmov 0.0  }
 0x177   : > { %3012 = vmatpush1.bf16.msra.mxu0 %v4849_v46 }
 0x178   : > { %3013 = vmatprep.subr.bf16.mxu0 %v4854_v47 }
 0x17b   : > { %3014 = vmatpush1.bf16.msra.mxu0 %v4852_v49 }
 0x17c   : > { %3015 = vmatprep.subr.bf16.mxu0 %v4857_v50 }
 0x17f   : > { %3016 = vmatpush1.bf16.msra.mxu0 %v4855_v51 }
 0x180   : > { %3017 = vmatprep.subr.bf16.mxu0 %v4860_v52 }
 0x183   : > { %3018 = vmatpush1.bf16.msra.mxu0 %v4858_v53 }
 0x184   : > { %3073 = vmatprep.subr.bf16.mxu0 %v4863_v54 }
 0x186   : > { %3020 = vmatmul.mubr.bf16.vlgmr.msra.gmra.mrb[4].mxu0 %v6042_v18 }
 0x187   : > { %3074 = vmatpush1.bf16.msra.mxu0 %v4861_v55  ;;  %3105 = vmatprep.mubr.bf16.mxu0 %v5852_v4  ;;  %v4870_v4 = vld [vmem:[%s6334_s1 + $0x9a0] ss:$24 sps:$4 sm:$0xff]  }
 0x188   : > { %3075 = vmatprep.subr.bf16.mxu0 %v4866_v56 }
 0x18b   : > { %3076 = vmatpush1.bf16.msra.mxu0 %v4864_v57 }
 0x18c   : > { %3077 = vmatprep.subr.bf16.mxu0 %v4869_v58 }
 0x18f   : > { %3078 = vmatpush1.bf16.msra.mxu0 %v4867_v60 }
 0x190   : > { %3079 = vmatprep.subr.bf16.mxu0 %v4872_v48 }
 0x193   : > { %3080 = vmatpush1.bf16.msra.mxu0 %v4870_v4 }
 0x194   : > { %3081 = vmatprep.subr.bf16.mxu0 %v4875_v31 }
 0x197   : > { %3082 = vmatpush1.bf16.msra.mxu0 %v4873_v61 }
 0x198   : > { %3083 = vmatprep.subr.bf16.mxu0 %v4878_v62 }
 0x19b   : > { %3084 = vmatpush1.bf16.msra.mxu0 %v4876_v63 }
 0x19c   : > { %3085 = vmatprep.subr.bf16.mxu0 %v4881_v1 }
 0x19f   : > { %3086 = vmatpush1.bf16.msra.mxu0 %v4879_v2 }
 0x1a0   : > { %3087 = vmatprep.subr.bf16.mxu0 %v4884_v3 }
 0x1a3   : > { %3088 = vmatpush1.bf16.msra.mxu0 %v4882_v5 }
 0x1a4   : > { %3089 = vmatprep.subr.bf16.mxu0 %v4887_v6 }
 0x1a7   : > { %3090 = vmatpush1.bf16.msra.mxu0 %v4885_v7 }
 0x1a8   : > { %3091 = vmatprep.subr.bf16.mxu0 %v4890_v8 }
 0x1ab   : > { %3092 = vmatpush1.bf16.msra.mxu0 %v4888_v9 }
 0x1ac   : > { %3093 = vmatprep.subr.bf16.mxu0 %v4893_v10 }
 0x1af   : > { %3094 = vmatpush1.bf16.msra.mxu0 %v4891_v11 }
 0x1b0   : > { %3095 = vmatprep.subr.bf16.mxu0 %v4896_v43 }
 0x1b3   : > { %3096 = vmatpush1.bf16.msra.mxu0 %v4894_v12 }
 0x1b4   : > { %3097 = vmatprep.subr.bf16.mxu0 %v4899_v13 }
 0x1b7   : > { %3098 = vmatpush1.bf16.msra.mxu0 %v4897_v14 }
 0x1b8   : > { %3099 = vmatprep.subr.bf16.mxu0 %v4902_v15 }
 0x1bb   : > { %3100 = vmatpush1.bf16.msra.mxu0 %v4900_v16 }
 0x1bc   : > { %3101 = vmatprep.subr.bf16.mxu0 %v4905_v17 }
 0x1bf   : > { %3102 = vmatpush1.bf16.msra.mxu0 %v4903_v19 }
 0x1c0   : > { %3103 = vmatprep.subr.bf16.mxu0 %v4908_v20 }
 0x1c3   : > { %3104 = vmatpush1.bf16.msra.mxu0 %v4906_v21 }
 0x1c6   : > { %3106 = vmatmul.mubr.bf16.vlgmr.msra.gmra.mrb[0].mxu0 %v6042_v18  ;;  %v4913_v18 = vld [vmem:[%s6335_s2 + $0x50] sm:$0xff]  }
 0x1c7   : > { %4239 = vmatprep.subr.bf16.mxu1 %v4913_v18 }
 0x1c8   : > { %4240 = vmatpush3.bf16.msra.mxu1 %v4914_v29 }
 0x1c9   : > { %4241 = vmatprep.subr.bf16.mxu1 %v4915_v35 }
 0x1cc   : > { %4242 = vmatpush3.bf16.msra.mxu1 %v4916_v37 }
 0x1cd   : > { %4243 = vmatprep.subr.bf16.mxu1 %v4917_v27 }
 0x1d0   : > { %4244 = vmatpush3.bf16.msra.mxu1 %v4918_v32 }
 0x1d1   : > { %4245 = vmatprep.subr.bf16.mxu1 %v4919_v38 }
 0x1d4   : > { %4246 = vmatpush3.bf16.msra.mxu1 %v4920_v39 }
 0x1d5   : > { %4247 = vmatprep.subr.bf16.mxu1 %v4921_v40 }
 0x1d8   : > { %4248 = vmatpush3.bf16.msra.mxu1 %v4922_v41  ;;  %v4925_v41 = vld [vmem:[%s6335_s2 + $0x80] sm:$0xff]  }
 0x1d9   : > { %4249 = vmatprep.subr.bf16.mxu1 %v4923_v42 }
 0x1dc   : > { %4250 = vmatpush3.bf16.msra.mxu1 %v4924_v44 }
 0x1dd   : > { %4266 = vmatprep.subr.bf16.mxu1 %v4959_v45 }
 0x219   : > { %v3064_v33 = vpop.f32.mrb[4].mxu1 }
 0x21a   : > { %v3066_v34 = vpop.f32.mrb[5].mxu1  ;;  %v3130_v8 = vmul.f32 %v3064_v33, %v3064_v33 }
 0x21b   : > { %v6254_v59 = vpop.f32.mrb[6].mxu1  ;;  %v3134_v52 = vmul.f32 %v3066_v34, %v3066_v34 }
 0x21c   : > { %v3070_v36 = vpop.f32.mrb[7].mxu1  ;;  %v3133_v14 = vmul.f32 %v6254_v59, %v6254_v59 }
 0x21d   : > { %v3137_v57 = vmul.f32 %v3070_v36, %v3070_v36 }
 0x259   : > { %v3021_v46 = vpop.f32.mrb[4].mxu0 }
 0x25a   : > { %v4286_v47 = vadd.f32 %v3021_v46, %v5910_v22  ;;  %v3023_v49 = vpop.f32.mrb[5].mxu0 }
 0x25b   : > { %v4287_v50 = vadd.f32 %v3023_v49, %v5912_v23  ;;  %v3025_v51 = vpop.f32.mrb[6].mxu0  ;;  %v4927_v49 = vld [vmem:[%s6335_s2 + $0x90] sm:$0xff]  }
 0x25c   : > { %v3128_v53 = vmul.f32 %v4286_v47, %v4286_v47  ;;  %v4288_v54 = vadd.f32 %v3025_v51, %v5920_v26  ;;  %v3027_v55 = vpop.f32.mrb[7].mxu0  ;;  %v4926_v47 = vld [vmem:[%s6335_s2 + $0x88] sm:$0xff]   ;;  %v4929_v51 = vld [vmem:[%s6335_s2 + $0xa0] sm:$0xff]  }
 0x25d   : > { %v4289_v56 = vadd.f32 %v3027_v55, %v5928_v30  ;;  %v3129_v5 = vmul.f32 %v4287_v50, %v4287_v50  ;;  %v4928_v50 = vld [vmem:[%s6335_s2 + $0x98] sm:$0xff]  }
 0x25e   : > { %v3140_v58 = vadd.f32 %v3134_v52, %v3128_v53  ;;  %v3131_v60 = vmul.f32 %v4288_v54, %v4288_v54  ;;  %v4930_v52 = vld [vmem:[%s6335_s2 + $0xa8] sm:$0xff]   ;;  %v4931_v53 = vld [vmem:[%s6335_s2 + $0xb0] sm:$0xff]   ;;  %v4932_v54 = vld [vmem:[%s6335_s2 + $0xb8] sm:$0xff]  }
 0x25f   : > { %v3132_v11 = vmul.f32 %v4289_v56, %v4289_v56 }
 0x260   : > { %4933 = vrsqrt.f32 %v3140_v58  ;;  %v3143_v48 = vadd.f32 %v3137_v57, %v3131_v60  ;;  %vm3148_vm3 = vcmp.eq.f32.partialorder %v3140_v58, inf  ;;  %v3151_v62 = vand.u32 2147483648, %v3140_v58 }
 0x261   : > { %vm3150_vm5 = vcmp.eq.f32.partialorder %v3140_v58, 0.0 }
 0x262   : > { %4935 = vrsqrt.f32 %v3143_v48  ;;  %vm3169_vm4 = vcmp.eq.f32.partialorder %v3143_v48, inf  ;;  %v3172_v63 = vand.u32 2147483648, %v3143_v48  ;;  %vm3171_vm6 = vcmp.eq.f32.partialorder %v3143_v48, 0.0 }
 0x26a   : > { %v4934_v4 = vpop.eup %4933 }
 0x26b   : > { %v3147_v31 = vmul.f32 %v4934_v4, %v3140_v58 }
 0x26c   : > { %v4936_v22 = vpop.eup %4935 }
 0x26d   : > { %v3149_v61 = vsel %vm3148_vm3, %v3140_v58, %v3147_v31  ;;  %v3168_v23 = vmul.f32 %v4936_v22, %v3143_v48 }
 0x26e   : > { %v3152_v1 = vsel %vm3150_vm5, %v3151_v62, %v3149_v61 }
 0x26f   : > { %v3170_v26 = vsel %vm3169_vm4, %v3143_v48, %v3168_v23 }
 0x270   : > { %v3173_v30 = vsel %vm3171_vm6, %v3172_v63, %v3170_v26 }
 0x271   : > { %v3188_v2 = vpack.c.bf16 %v3173_v30, %v3152_v1 }
 0x299   : > { %v3107_v3 = vpop.f32.mrb[0].mxu0 }
 0x29a   : > { %v3135_v6 = vmul.f32 %v3107_v3, %v3107_v3  ;;  %v3109_v7 = vpop.f32.mrb[1].mxu0 }
 0x29b   : > { %v3136_v9 = vmul.f32 %v3109_v7, %v3109_v7  ;;  %v3111_v10 = vpop.f32.mrb[2].mxu0 }
 0x29c   : > { %v3141_v43 = vadd.f32 %v3135_v6, %v3129_v5  ;;  %v3138_v12 = vmul.f32 %v3111_v10, %v3111_v10  ;;  %v3113_v13 = vpop.f32.mrb[3].mxu0 }
 0x29d   : > { %v3142_v15 = vadd.f32 %v3136_v9, %v3130_v8  ;;  %v3139_v16 = vmul.f32 %v3113_v13, %v3113_v13 }
 0x29e   : > { %4937 = vrsqrt.f32 %v3141_v43  ;;  %v3144_v17 = vadd.f32 %v3138_v12, %v3132_v11  ;;  %vm3155_vm7 = vcmp.eq.f32.partialorder %v3141_v43, inf  ;;  %vm3157_vm8 = vcmp.eq.f32.partialorder %v3141_v43, 0.0 }
 0x29f   : > { %4939 = vrsqrt.f32 %v3142_v15  ;;  %v3145_v19 = vadd.f32 %v3139_v16, %v3133_v14  ;;  %v3158_v25 = vand.u32 2147483648, %v3141_v43  ;;  %vm3162_vm9 = vcmp.eq.f32.partialorder %v3142_v15, inf }
 0x2a0   : > { %4941 = vrsqrt.f32 %v3144_v17  ;;  %vm3176_vm10 = vcmp.eq.f32.partialorder %v3144_v17, inf  ;;  %vm3178_vm11 = vcmp.eq.f32.partialorder %v3144_v17, 0.0  ;;  %v3179_v34 = vand.u32 2147483648, %v3144_v17 }
 0x2a1   : > { %4943 = vrsqrt.f32 %v3145_v19  ;;  %vm3164_vm12 = vcmp.eq.f32.partialorder %v3142_v15, 0.0  ;;  %v3165_v37 = vand.u32 2147483648, %v3142_v15  ;;  %vm3183_vm13 = vcmp.eq.f32.partialorder %v3145_v19, inf }
 0x2a2   : > { %v3186_v27 = vand.u32 2147483648, %v3145_v19  ;;  %vm3185_vm14 = vcmp.eq.f32.partialorder %v3145_v19, 0.0 }
 0x2a8   : > { %v4938_v20 = vpop.eup %4937 }
 0x2a9   : > { %v4940_v21 = vpop.eup %4939  ;;  %v3154_v24 = vmul.f32 %v4938_v20, %v3141_v43 }
 0x2aa   : > { %v4942_v0 = vpop.eup %4941  ;;  %v3161_v28 = vmul.f32 %v4940_v21, %v3142_v15 }
 0x2ab   : > { %v4944_v18 = vpop.eup %4943  ;;  %v3156_v29 = vsel %vm3155_vm7, %v3141_v43, %v3154_v24  ;;  %v3175_v33 = vmul.f32 %v4942_v0, %v3144_v17 }
 0x2ac   : > { %v3163_v59 = vsel %vm3162_vm9, %v3142_v15, %v3161_v28  ;;  %v3182_v35 = vmul.f32 %v4944_v18, %v3145_v19  ;;  %v3159_v32 = vsel %vm3157_vm8, %v3158_v25, %v3156_v29 }
 0x2ad   : > { %v3177_v36 = vsel %vm3176_vm10, %v3144_v17, %v3175_v33  ;;  %v3166_v42 = vsel %vm3164_vm12, %v3165_v37, %v3163_v59 }
 0x2ae   : > { %v3180_v38 = vsel %vm3178_vm11, %v3179_v34, %v3177_v36  ;;  %v3184_v39 = vsel %vm3183_vm13, %v3145_v19, %v3182_v35 }
 0x2af   : > { %v3189_v40 = vpack.c.bf16 %v3180_v38, %v3159_v32  ;;  %v3187_v44 = vsel %vm3185_vm14, %v3186_v27, %v3184_v39 }
 0x2b0   : > { %v3190_v46 = vpack.c.bf16 %v3187_v44, %v3166_v42 }
 0x2b1   : > { %3415 = vmatprep.mubr.bf16.mxu1 %v3189_v40 }
 0x2b2   : > { %3416 = vmatmul.mubr.bf16.vlgmr.msra.gmra.mrb[8].mxu1 %v3188_v2 }
 0x2b3   : > { %4267 = vmatpush3.bf16.msra.mxu1 %v4925_v41  ;;  %4282 = vmatprep.mubr.msk.bf16.mxu1 %vm4960_vm15, %v4959_v45 }
 0x2b4   : > { %4268 = vmatprep.subr.bf16.mxu1 %v4959_v45 }
 0x2b7   : > { %4269 = vmatpush3.bf16.msra.mxu1 %v4926_v47 }
 0x2b8   : > { %4270 = vmatprep.subr.bf16.mxu1 %v4959_v45 }
 0x2bb   : > { %4271 = vmatpush3.bf16.msra.mxu1 %v4927_v49 }
 0x2bc   : > { %4272 = vmatprep.subr.bf16.mxu1 %v4959_v45 }
 0x2bf   : > { %4273 = vmatpush3.bf16.msra.mxu1 %v4928_v50 }
 0x2c0   : > { %4274 = vmatprep.subr.bf16.mxu1 %v4959_v45 }
 0x2c3   : > { %4275 = vmatpush3.bf16.msra.mxu1 %v4929_v51 }
 0x2c4   : > { %4276 = vmatprep.subr.bf16.mxu1 %v4959_v45 }
 0x2c7   : > { %4277 = vmatpush3.bf16.msra.mxu1 %v4930_v52 }
 0x2c8   : > { %4278 = vmatprep.subr.bf16.mxu1 %v4959_v45 }
 0x2cb   : > { %4279 = vmatpush3.bf16.msra.mxu1 %v4931_v53 }
 0x2cc   : > { %4280 = vmatprep.subr.bf16.mxu1 %v4959_v45 }
 0x2cf   : > { %4281 = vmatpush3.bf16.msra.mxu1 %v4932_v54 }
 0x2d2   : > { %4283 = vmatmul.mubr.bf16.vlgmr.msra.gmra.mrb[12].mxu1 %v3190_v46 }
 0x385   : > { %v4251_v55 = vpop.f32.mrb[8].mxu1 }
 0x386   : > { %v4252_v56 = vpop.f32.mrb[9].mxu1 }
 0x387   : > { %v4253_v57 = vadd.f32 %v4252_v56, %v4251_v55  ;;  %v4254_v58 = vpop.f32.mrb[10].mxu1 }
 0x388   : > { %v4255_v60 = vpop.f32.mrb[11].mxu1 }
 0x389   : > { %v4256_v48 = vadd.f32 %v4255_v60, %v4254_v58 }
 0x3a5   : > { %v3458_v4 = vpop.f32.mrb[12].mxu1 }
 0x3a6   : > { %v3459_v31 = vadd.f32 %v4253_v57, %v3458_v4  ;;  %v4284_v22 = vpop.f32.mrb[13].mxu1 }
 0x3a7   : > { %v3461_v61 = vpop.f32.mrb[14].mxu1 }
 0x3a8   : > { %v3465_v23 = vmax.f32 %v3459_v31, 1e-05  ;;  %v3462_v62 = vadd.f32 %v4256_v48, %v3461_v61  ;;  %v4285_v63 = vpop.f32.mrb[15].mxu1 }
 0x3aa   : > { %4945 = vlog2.f32 %v3465_v23  ;;  %v3466_v26 = vmax.f32 %v3462_v62, 1e-05 }
 0x3ac   : > { %4947 = vlog2.f32 %v3466_v26 }
 0x3b4   : > { %v4946_v45 = vpop.eup %4945 }
 0x3b5   : > { %v3468_v1 = vmul.f32 0.6931472, %v4946_v45 }
 0x3b6   : > { %v4948_v30 = vpop.eup %4947 }
 0x3b7   : > { %3471 = vst [vmem:[%s170_s6] sm:$0xff] %v3468_v1  ;;  %v3470_v2 = vmul.f32 0.6931472, %v4948_v30 }
 0x3b9   : > { %3472 = vst [vmem:[%s170_s6 + $0x8] sm:$0xff] %v3470_v2 }
 0x3ba PF: > { %s13_s12 = sadd.s32 1, %s4957_s12  }
 0x3bb   : > { %p10_p4 = scmp.ge.s32.totalorder %s13_s12, 4  }
 0x3bd   :  { %12 = sbr.rel (!%p10_p4) target bundleno = 1 (0x1), region = 65 }

</bundles_post_ra>
